<compile_context>
chip_gen: v6e
topology: v6e:2x2x1
jax: 0.10.0
libtpu: 0.0.40
codegen_flags: <defaults>
</compile_context>

<pallas_src>
import jax
import jax.numpy as jnp
from jax.experimental import pallas as pl
from jax.experimental.pallas import tpu as pltpu  # noqa: F401  (kept for TPU-specific tuning hooks)


# ---------------- Fused Pallas kernel ----------------

def fused_cnn_kernel(x_ref, wc_ref, bc_ref, wf_ref, bf_ref, o_ref):
    # x_ref:  (B, 4, P, KKC)  im2col patches, one slab per 2x2 pool corner, rows = (hp, wp)
    # wc_ref: (KKC, Cout)     conv1 weight as a matmul operand
    # bc_ref: (1, Cout)       conv1 bias
    # wf_ref: (2, P, Cout)    folded fc1@fc2 weight, permuted to the pooled (row, channel) layout
    # bf_ref: (1, 2)          folded fc bias
    # o_ref:  (B, 2)          final logits
    wc = wc_ref[...]
    bc = bc_ref[...]
    bf = bf_ref[...]
    col = jax.lax.broadcasted_iota(jnp.int32, (1, 2), 1)   # [[0, 1]]

    n_b = x_ref.shape[0]
    for b in range(n_b):                                   # static unroll (B is tiny)
        # conv1 as 4 corner matmuls; the 2x2 max-pool is just an elementwise max of them.
        acc = jnp.dot(x_ref[b, 0], wc, preferred_element_type=jnp.float32)
        for d in range(1, 4):
            acc = jnp.maximum(acc, jnp.dot(x_ref[b, d], wc,
                                           preferred_element_type=jnp.float32))
        # bias-add + ReLU commute with the max (both monotone), so apply them once.
        pooled = jnp.maximum(acc + bc, 0.0)                # (P, Cout)

        # Folded fc1->fc2: only 2 output units, so each is a weighted full reduction
        # of the pooled activations (VPU multiply + XLU reduce; MXU not needed).
        s0 = jnp.sum(jnp.sum(pooled * wf_ref[0], axis=1, keepdims=True),
                     axis=0, keepdims=True)                # (1, 1)
        s1 = jnp.sum(jnp.sum(pooled * wf_ref[1], axis=1, keepdims=True),
                     axis=0, keepdims=True)                # (1, 1)
        o_ref[b:b + 1, :] = jnp.where(col == 0, s0, s1) + bf


# ---------------- Parameter prep (done once, outside the hot path) ----------------

def prepare_params(w_conv, b_conv, w_fc1, b_fc1, w_fc2, b_fc2, *, k, cin, hp, wp):
    cout = w_conv.shape[0]
    kkc = k * k * cin
    # PyTorch conv weight (Cout, Cin, kh, kw) -> (kh, kw, Cin, Cout) -> (KKC, Cout)
    w_mat = jnp.transpose(w_conv, (2, 3, 1, 0)).reshape(kkc, cout)
    b_row = b_conv.reshape(1, cout)
    # Fold fc2 into fc1 (no nonlinearity between them).
    w_fold = w_fc1.T @ w_fc2.T                              # (cout*hp*wp, 2)
    b_fold = (b_fc1 @ w_fc2.T + b_fc2).reshape(1, 2)
    # Permute rows from PyTorch's NCHW flatten order (c, hp, wp) to the kernel's pooled
    # layout (rows = hp*wp, cols = c), one (P, Cout) slab per output unit.
    w_fc = jnp.transpose(w_fold.reshape(cout, hp, wp, 2), (3, 1, 2, 0)).reshape(2, hp * wp, cout)
    return w_mat, b_row, w_fc, b_fold


# ---------------- Forward wrapper ----------------

def cnn_forward(x, w_mat, b_row, w_fc, b_fold, *, k, s):
    x = x.astype(jnp.float32)                               # torch.tensor(input, dtype=torch.float)
    B, H, W, cin = x.shape
    ho = (H - k) // s + 1
    wo = (W - k) // s + 1
    hp, wp = ho // 2, wo // 2                               # MaxPool2d floor behavior
    p = hp * wp
    kkc = k * k * cin

    # Pool-corner im2col: for each 2x2 pool corner (dh, dw) build the im2col matrix of the
    # conv outputs it contributes; rows ordered (hp, wp), features ordered (kh, kw, ci).
    corners = []
    for dh in range(2):
        for dw in range(2):
            feats = []
            for kh in range(k):
                for kw in range(k):
                    h0 = s * dh + kh
                    w0 = s * dw + kw
                    feats.append(x[:, h0:h0 + 2 * s * hp:2 * s,
                                     w0:w0 + 2 * s * wp:2 * s, :])
            corners.append(jnp.concatenate(feats, axis=-1).reshape(B, p, kkc))
    patches = jnp.stack(corners, axis=1)                    # (B, 4, P, KKC)

    # Single fused pallas_call: conv + ReLU + pool + flatten + folded fc, all in VMEM.
    return pl.pallas_call(
        fused_cnn_kernel,
        out_shape=jax.ShapeDtypeStruct((B, 2), jnp.float32),
    )(patches, w_mat, b_row, w_fc, b_fold)


# ---------------- Pure-JAX reference (unfolded, original module semantics) ----------------

def ref_forward(x, w_conv, b_conv, w_fc1, b_fc1, w_fc2, b_fc2, *, k, s):
    xt = jnp.transpose(x.astype(jnp.float32), (0, 3, 1, 2))          # NHWC -> NCHW
    y = jax.lax.conv_general_dilated(
        xt, w_conv, (s, s), 'VALID', dimension_numbers=('NCHW', 'OIHW', 'NCHW'))
    y = jnp.maximum(y + b_conv[None, :, None, None], 0.0)
    y = jax.lax.reduce_window(y, -jnp.inf, jax.lax.max,
                              (1, 1, 2, 2), (1, 1, 2, 2), 'VALID')
    y = y.reshape(y.shape[0], -1)
    y = y @ w_fc1.T + b_fc1
    y = y @ w_fc2.T + b_fc2
    return y


if __name__ == "__main__":
    key = jax.random.PRNGKey(0)
    k1, k2, k3, k4, k5, k6, k7 = jax.random.split(key, 7)

    kernel_size = (3, 3)
    stride = (1, 1)
    B, H, W, Cin = 2, 30, 16, 7
    Cout = 32
    Ho = (H - kernel_size[0]) // stride[0] + 1          # 28
    Wo = (W - kernel_size[0]) // stride[0] + 1          # 14
    Hp, Wp = Ho // 2, Wo // 2                           # 14, 7  ->  32*14*7 = 3136

    # Deterministic synthetic parameters (PyTorch parameter shapes).
    w_conv = jax.random.normal(k1, (Cout, Cin, kernel_size[0], kernel_size[0]), jnp.float32) * 0.05
    b_conv = jax.random.normal(k2, (Cout,), jnp.float32) * 0.05
    w_fc1 = jax.random.normal(k3, (128, Cout * Hp * Wp), jnp.float32) * 0.02
    b_fc1 = jax.random.normal(k4, (128,), jnp.float32) * 0.02
    w_fc2 = jax.random.normal(k5, (2, 128), jnp.float32) * 0.05
    b_fc2 = jax.random.normal(k6, (2,), jnp.float32) * 0.05
    x = jax.random.normal(k7, (B, H, W, Cin), jnp.float32)

    params = prepare_params(w_conv, b_conv, w_fc1, b_fc1, w_fc2, b_fc2,
                            k=kernel_size[0], cin=Cin, hp=Hp, wp=Wp)

    fwd = jax.jit(cnn_forward, static_argnames=("k", "s"))
    out = jax.block_until_ready(fwd(x, *params, k=kernel_size[0], s=stride[0]))

    ref = jax.block_until_ready(
        ref_forward(x, w_conv, b_conv, w_fc1, b_fc1, w_fc2, b_fc2,
                    k=kernel_size[0], s=stride[0]))

    assert out.shape == (B, 2), out.shape
    assert jnp.allclose(out, ref, rtol=1e-2, atol=1e-2), (out, ref)
    print("KERNEL_OK")
</pallas_src>

<mosaic_0001>
module attributes {stable_mosaic.version = 11 : i64} {
  func.func @fused_cnn_kernel(%arg0: memref<2x4x98x63xf32, #tpu.memory_space<vmem>>, %arg1: memref<63x32xf32, #tpu.memory_space<vmem>>, %arg2: memref<1x32xf32, #tpu.memory_space<vmem>>, %arg3: memref<2x98x32xf32, #tpu.memory_space<vmem>>, %arg4: memref<1x2xf32, #tpu.memory_space<vmem>>, %arg5: memref<2x2xf32, #tpu.memory_space<vmem>>) attributes {dimension_semantics = [], scalar_prefetch = 0 : i64, scratch_operands = 0 : i64, tpu.core_type = #tpu.core_type<tc>} {
    %c0 = arith.constant 0 : index
    %c0_0 = arith.constant 0 : index
    %0 = vector.load %arg1[%c0, %c0_0] : memref<63x32xf32, #tpu.memory_space<vmem>>, vector<63x32xf32>
    %c0_1 = arith.constant 0 : index
    %c0_2 = arith.constant 0 : index
    %1 = vector.load %arg2[%c0_1, %c0_2] : memref<1x32xf32, #tpu.memory_space<vmem>>, vector<1x32xf32>
    %c0_3 = arith.constant 0 : index
    %c0_4 = arith.constant 0 : index
    %2 = vector.load %arg4[%c0_3, %c0_4] : memref<1x2xf32, #tpu.memory_space<vmem>>, vector<1x2xf32>
    %3 = tpu.iota {dimensions = array<i32: 1>} : vector<1x2xi32>
    %c0_5 = arith.constant 0 : index
    %c0_6 = arith.constant 0 : index
    %c0_7 = arith.constant 0 : index
    %c0_8 = arith.constant 0 : index
    %4 = vector.load %arg0[%c0_5, %c0_6, %c0_7, %c0_8] : memref<2x4x98x63xf32, #tpu.memory_space<vmem>>, vector<1x1x98x63xf32>
    %5 = vector.shape_cast %4 : vector<1x1x98x63xf32> to vector<98x63xf32>
    %cst = arith.constant dense<0.000000e+00> : vector<98x32xf32>
    %6 = tpu.matmul %5, %0, %cst {dimension_numbers = #tpu.dot_dimension_numbers<[1], [0], [0], [1], [0, 0, 1, 1], [], []>} : vector<98x63xf32>, vector<63x32xf32>, vector<98x32xf32> -> vector<98x32xf32>
    %c0_9 = arith.constant 0 : index
    %c1 = arith.constant 1 : index
    %c0_10 = arith.constant 0 : index
    %c0_11 = arith.constant 0 : index
    %7 = vector.load %arg0[%c0_9, %c1, %c0_10, %c0_11] : memref<2x4x98x63xf32, #tpu.memory_space<vmem>>, vector<1x1x98x63xf32>
    %8 = vector.shape_cast %7 : vector<1x1x98x63xf32> to vector<98x63xf32>
    %cst_12 = arith.constant dense<0.000000e+00> : vector<98x32xf32>
    %9 = tpu.matmul %8, %0, %cst_12 {dimension_numbers = #tpu.dot_dimension_numbers<[1], [0], [0], [1], [0, 0, 1, 1], [], []>} : vector<98x63xf32>, vector<63x32xf32>, vector<98x32xf32> -> vector<98x32xf32>
    %10 = arith.maximumf %6, %9 : vector<98x32xf32>
    %c0_13 = arith.constant 0 : index
    %c2 = arith.constant 2 : index
    %c0_14 = arith.constant 0 : index
    %c0_15 = arith.constant 0 : index
    %11 = vector.load %arg0[%c0_13, %c2, %c0_14, %c0_15] : memref<2x4x98x63xf32, #tpu.memory_space<vmem>>, vector<1x1x98x63xf32>
    %12 = vector.shape_cast %11 : vector<1x1x98x63xf32> to vector<98x63xf32>
    %cst_16 = arith.constant dense<0.000000e+00> : vector<98x32xf32>
    %13 = tpu.matmul %12, %0, %cst_16 {dimension_numbers = #tpu.dot_dimension_numbers<[1], [0], [0], [1], [0, 0, 1, 1], [], []>} : vector<98x63xf32>, vector<63x32xf32>, vector<98x32xf32> -> vector<98x32xf32>
    %14 = arith.maximumf %10, %13 : vector<98x32xf32>
    %c0_17 = arith.constant 0 : index
    %c3 = arith.constant 3 : index
    %c0_18 = arith.constant 0 : index
    %c0_19 = arith.constant 0 : index
    %15 = vector.load %arg0[%c0_17, %c3, %c0_18, %c0_19] : memref<2x4x98x63xf32, #tpu.memory_space<vmem>>, vector<1x1x98x63xf32>
    %16 = vector.shape_cast %15 : vector<1x1x98x63xf32> to vector<98x63xf32>
    %cst_20 = arith.constant dense<0.000000e+00> : vector<98x32xf32>
    %17 = tpu.matmul %16, %0, %cst_20 {dimension_numbers = #tpu.dot_dimension_numbers<[1], [0], [0], [1], [0, 0, 1, 1], [], []>} : vector<98x63xf32>, vector<63x32xf32>, vector<98x32xf32> -> vector<98x32xf32>
    %18 = arith.maximumf %14, %17 : vector<98x32xf32>
    %19 = vector.broadcast %1 : vector<1x32xf32> to vector<98x32xf32>
    %20 = arith.addf %18, %19 : vector<98x32xf32>
    %cst_21 = arith.constant 0.000000e+00 : f32
    %21 = vector.broadcast %cst_21 : f32 to vector<98x32xf32>
    %22 = arith.maximumf %20, %21 : vector<98x32xf32>
    %c0_22 = arith.constant 0 : index
    %c0_23 = arith.constant 0 : index
    %c0_24 = arith.constant 0 : index
    %23 = vector.load %arg3[%c0_22, %c0_23, %c0_24] : memref<2x98x32xf32, #tpu.memory_space<vmem>>, vector<1x98x32xf32>
    %24 = vector.shape_cast %23 : vector<1x98x32xf32> to vector<98x32xf32>
    %25 = arith.mulf %22, %24 : vector<98x32xf32>
    %cst_25 = arith.constant dense<0.000000e+00> : vector<98xf32>
    %26 = vector.multi_reduction <add>, %25, %cst_25 [1] : vector<98x32xf32> to vector<98xf32>
    %27 = vector.shape_cast %26 : vector<98xf32> to vector<98x1xf32>
    %cst_26 = arith.constant dense<0.000000e+00> : vector<1xf32>
    %28 = vector.multi_reduction <add>, %27, %cst_26 [0] : vector<98x1xf32> to vector<1xf32>
    %29 = vector.shape_cast %28 : vector<1xf32> to vector<1x1xf32>
    %c1_27 = arith.constant 1 : index
    %c0_28 = arith.constant 0 : index
    %c0_29 = arith.constant 0 : index
    %30 = vector.load %arg3[%c1_27, %c0_28, %c0_29] : memref<2x98x32xf32, #tpu.memory_space<vmem>>, vector<1x98x32xf32>
    %31 = vector.shape_cast %30 : vector<1x98x32xf32> to vector<98x32xf32>
    %32 = arith.mulf %22, %31 : vector<98x32xf32>
    %cst_30 = arith.constant dense<0.000000e+00> : vector<98xf32>
    %33 = vector.multi_reduction <add>, %32, %cst_30 [1] : vector<98x32xf32> to vector<98xf32>
    %34 = vector.shape_cast %33 : vector<98xf32> to vector<98x1xf32>
    %cst_31 = arith.constant dense<0.000000e+00> : vector<1xf32>
    %35 = vector.multi_reduction <add>, %34, %cst_31 [0] : vector<98x1xf32> to vector<1xf32>
    %36 = vector.shape_cast %35 : vector<1xf32> to vector<1x1xf32>
    %c0_i32 = arith.constant 0 : i32
    %37 = vector.broadcast %c0_i32 : i32 to vector<1x2xi32>
    %38 = arith.cmpi eq, %3, %37 : vector<1x2xi32>
    %39 = vector.shape_cast %29 : vector<1x1xf32> to vector<1x1xf32>
    %40 = vector.broadcast %39 : vector<1x1xf32> to vector<1x2xf32>
    %41 = vector.shape_cast %36 : vector<1x1xf32> to vector<1x1xf32>
    %42 = vector.broadcast %41 : vector<1x1xf32> to vector<1x2xf32>
    %43 = arith.select %38, %40, %42 : vector<1x2xi1>, vector<1x2xf32>
    %44 = arith.addf %43, %2 : vector<1x2xf32>
    %c0_32 = arith.constant 0 : index
    %c0_33 = arith.constant 0 : index
    %45 = vector.load %arg5[%c0_32, %c0_33] : memref<2x2xf32, #tpu.memory_space<vmem>>, vector<1x2xf32>
    tpu.vector_store %arg5[%c0_32, %c0_33], %44 {strides = array<i32>} : memref<2x2xf32, #tpu.memory_space<vmem>>, vector<1x2xf32>,
    %c1_34 = arith.constant 1 : index
    %c0_35 = arith.constant 0 : index
    %c0_36 = arith.constant 0 : index
    %c0_37 = arith.constant 0 : index
    %46 = vector.load %arg0[%c1_34, %c0_35, %c0_36, %c0_37] : memref<2x4x98x63xf32, #tpu.memory_space<vmem>>, vector<1x1x98x63xf32>
    %47 = vector.shape_cast %46 : vector<1x1x98x63xf32> to vector<98x63xf32>
    %cst_38 = arith.constant dense<0.000000e+00> : vector<98x32xf32>
    %48 = tpu.matmul %47, %0, %cst_38 {dimension_numbers = #tpu.dot_dimension_numbers<[1], [0], [0], [1], [0, 0, 1, 1], [], []>} : vector<98x63xf32>, vector<63x32xf32>, vector<98x32xf32> -> vector<98x32xf32>
    %c1_39 = arith.constant 1 : index
    %c1_40 = arith.constant 1 : index
    %c0_41 = arith.constant 0 : index
    %c0_42 = arith.constant 0 : index
    %49 = vector.load %arg0[%c1_39, %c1_40, %c0_41, %c0_42] : memref<2x4x98x63xf32, #tpu.memory_space<vmem>>, vector<1x1x98x63xf32>
    %50 = vector.shape_cast %49 : vector<1x1x98x63xf32> to vector<98x63xf32>
    %cst_43 = arith.constant dense<0.000000e+00> : vector<98x32xf32>
    %51 = tpu.matmul %50, %0, %cst_43 {dimension_numbers = #tpu.dot_dimension_numbers<[1], [0], [0], [1], [0, 0, 1, 1], [], []>} : vector<98x63xf32>, vector<63x32xf32>, vector<98x32xf32> -> vector<98x32xf32>
    %52 = arith.maximumf %48, %51 : vector<98x32xf32>
    %c1_44 = arith.constant 1 : index
    %c2_45 = arith.constant 2 : index
    %c0_46 = arith.constant 0 : index
    %c0_47 = arith.constant 0 : index
    %53 = vector.load %arg0[%c1_44, %c2_45, %c0_46, %c0_47] : memref<2x4x98x63xf32, #tpu.memory_space<vmem>>, vector<1x1x98x63xf32>
    %54 = vector.shape_cast %53 : vector<1x1x98x63xf32> to vector<98x63xf32>
    %cst_48 = arith.constant dense<0.000000e+00> : vector<98x32xf32>
    %55 = tpu.matmul %54, %0, %cst_48 {dimension_numbers = #tpu.dot_dimension_numbers<[1], [0], [0], [1], [0, 0, 1, 1], [], []>} : vector<98x63xf32>, vector<63x32xf32>, vector<98x32xf32> -> vector<98x32xf32>
    %56 = arith.maximumf %52, %55 : vector<98x32xf32>
    %c1_49 = arith.constant 1 : index
    %c3_50 = arith.constant 3 : index
    %c0_51 = arith.constant 0 : index
    %c0_52 = arith.constant 0 : index
    %57 = vector.load %arg0[%c1_49, %c3_50, %c0_51, %c0_52] : memref<2x4x98x63xf32, #tpu.memory_space<vmem>>, vector<1x1x98x63xf32>
    %58 = vector.shape_cast %57 : vector<1x1x98x63xf32> to vector<98x63xf32>
    %cst_53 = arith.constant dense<0.000000e+00> : vector<98x32xf32>
    %59 = tpu.matmul %58, %0, %cst_53 {dimension_numbers = #tpu.dot_dimension_numbers<[1], [0], [0], [1], [0, 0, 1, 1], [], []>} : vector<98x63xf32>, vector<63x32xf32>, vector<98x32xf32> -> vector<98x32xf32>
    %60 = arith.maximumf %56, %59 : vector<98x32xf32>
    %61 = vector.broadcast %1 : vector<1x32xf32> to vector<98x32xf32>
    %62 = arith.addf %60, %61 : vector<98x32xf32>
    %cst_54 = arith.constant 0.000000e+00 : f32
    %63 = vector.broadcast %cst_54 : f32 to vector<98x32xf32>
    %64 = arith.maximumf %62, %63 : vector<98x32xf32>
    %c0_55 = arith.constant 0 : index
    %c0_56 = arith.constant 0 : index
    %c0_57 = arith.constant 0 : index
    %65 = vector.load %arg3[%c0_55, %c0_56, %c0_57] : memref<2x98x32xf32, #tpu.memory_space<vmem>>, vector<1x98x32xf32>
    %66 = vector.shape_cast %65 : vector<1x98x32xf32> to vector<98x32xf32>
    %67 = arith.mulf %64, %66 : vector<98x32xf32>
    %cst_58 = arith.constant dense<0.000000e+00> : vector<98xf32>
    %68 = vector.multi_reduction <add>, %67, %cst_58 [1] : vector<98x32xf32> to vector<98xf32>
    %69 = vector.shape_cast %68 : vector<98xf32> to vector<98x1xf32>
    %cst_59 = arith.constant dense<0.000000e+00> : vector<1xf32>
    %70 = vector.multi_reduction <add>, %69, %cst_59 [0] : vector<98x1xf32> to vector<1xf32>
    %71 = vector.shape_cast %70 : vector<1xf32> to vector<1x1xf32>
    %c1_60 = arith.constant 1 : index
    %c0_61 = arith.constant 0 : index
    %c0_62 = arith.constant 0 : index
    %72 = vector.load %arg3[%c1_60, %c0_61, %c0_62] : memref<2x98x32xf32, #tpu.memory_space<vmem>>, vector<1x98x32xf32>
    %73 = vector.shape_cast %72 : vector<1x98x32xf32> to vector<98x32xf32>
    %74 = arith.mulf %64, %73 : vector<98x32xf32>
    %cst_63 = arith.constant dense<0.000000e+00> : vector<98xf32>
    %75 = vector.multi_reduction <add>, %74, %cst_63 [1] : vector<98x32xf32> to vector<98xf32>
    %76 = vector.shape_cast %75 : vector<98xf32> to vector<98x1xf32>
    %cst_64 = arith.constant dense<0.000000e+00> : vector<1xf32>
    %77 = vector.multi_reduction <add>, %76, %cst_64 [0] : vector<98x1xf32> to vector<1xf32>
    %78 = vector.shape_cast %77 : vector<1xf32> to vector<1x1xf32>
    %c0_i32_65 = arith.constant 0 : i32
    %79 = vector.broadcast %c0_i32_65 : i32 to vector<1x2xi32>
    %80 = arith.cmpi eq, %3, %79 : vector<1x2xi32>
    %81 = vector.shape_cast %71 : vector<1x1xf32> to vector<1x1xf32>
    %82 = vector.broadcast %81 : vector<1x1xf32> to vector<1x2xf32>
    %83 = vector.shape_cast %78 : vector<1x1xf32> to vector<1x1xf32>
    %84 = vector.broadcast %83 : vector<1x1xf32> to vector<1x2xf32>
    %85 = arith.select %80, %82, %84 : vector<1x2xi1>, vector<1x2xf32>
    %86 = arith.addf %85, %2 : vector<1x2xf32>
    %c1_66 = arith.constant 1 : index
    %c0_67 = arith.constant 0 : index
    %87 = vector.load %arg5[%c1_66, %c0_67] : memref<2x2xf32, #tpu.memory_space<vmem>>, vector<1x2xf32>
    tpu.vector_store %arg5[%c1_66, %c0_67], %86 {strides = array<i32>} : memref<2x2xf32, #tpu.memory_space<vmem>>, vector<1x2xf32>,
    return
  }
}

</mosaic_0001>

<bundles_post_ra>
// kernel: cnn_forward.1
= control target key start
LH: loop header
LB: loop body
LE: loop exit
PB: predicated region body
PF: predicated region fallthrough
CT: control target
= control target key end

     0   :  { %vm86_vm0 = vcmask 1046528   ;;  %v2862_v1 = vmov 0.0   ;;  %vm46_vm1 = vcmask 515072   ;;  %vm2863_vm2 = vmmov 0   ;;  %s4134_s0 = inlined_call_operand.vmem [shape: f32[2,4,98,63], index: 0, kind: input, shape index: {}]   ;;  %s4135_s1 = inlined_call_operand.vmem [shape: f32[63,32], index: 1, kind: input, shape index: {}]   ;;  %s4136_s2 = inlined_call_operand.vmem [shape: f32[1,32], index: 2, kind: input, shape index: {}]   ;;  %s4137_s3 = inlined_call_operand.vmem [shape: f32[2,98,32], index: 3, kind: input, shape index: {}]   ;;  %s4138_s4 = inlined_call_operand.vmem [shape: f32[1,2], index: 4, kind: input, shape index: {}]   ;;  %s4139_s5 = inlined_call_operand.hbm [shape: f32[2,2], index: 5, kind: output, shape index: {}]  }
   0x1   :  { %v2898_v0 = vld [vmem:[%s4135_s1 + $0x38] sm:$0x7f]  ;;  %2397 = vmatprep.subr.mxu0 %v2862_v1  ;;  %2452 = vmatprep.subr.mxu1 %v2862_v1  ;;  %v2905_v2 = vld [vmem:[%s4135_s1 + $0x30] sm:$0xff]  ;;  %v2916_v3 = vld [vmem:[%s4135_s1 + $0x28] sm:$0xff] }
   0x2   :  { %2398 = vmatpush3.msk.msra.mxu0 %vm86_vm0, %v2898_v0  ;;  %2453 = vmatpush3.msk.msra.mxu1 %vm86_vm0, %v2898_v0  ;;  %v2925_v4 = vld [vmem:[%s4135_s1 + $0x20] sm:$0xff]  ;;  %v2934_v5 = vld [vmem:[%s4135_s1 + $0x18] sm:$0xff]  ;;  %v2943_v6 = vld [vmem:[%s4135_s1 + $0x10] sm:$0xff] }
   0x3   :  { %2399 = vmatprep.subr.mxu0 %v2862_v1  ;;  %2454 = vmatprep.subr.mxu1 %v2862_v1  ;;  %v2952_v7 = vld [vmem:[%s4135_s1 + $0x8] sm:$0xff]  ;;  %v2961_v8 = vld [vmem:[%s4135_s1] sm:$0xff]  ;;  %v2014_v12 = vld [vmem:[%s4134_s0 + $0x70] sm:$0xff] }
   0x4   :  { %2400 = vmatpush3.msra.mxu0 %v2905_v2  ;;  %2455 = vmatpush3.msra.mxu1 %v2905_v2  ;;  %v33_v9 = vld [vmem:[%s4134_s0] sm:$0xff]  ;;  %v2013_v10 = vld [vmem:[%s4134_s0 + $0x68] sm:$0xff]  ;;  %v35_v13 = vld [vmem:[%s4134_s0 + $0x10] sm:$0xff] }
   0x5   :  { %2401 = vmatprep.subr.mxu0 %v2862_v1  ;;  %2456 = vmatprep.subr.mxu1 %v2862_v1  ;;  %v34_v11 = vld [vmem:[%s4134_s0 + $0x8] sm:$0xff]  ;;  %v2015_v14 = vld [vmem:[%s4134_s0 + $0x78] sm:$0xff] }
   0x6   :  { %2402 = vmatpush3.msra.mxu0 %v2916_v3  ;;  %2457 = vmatpush3.msra.mxu1 %v2916_v3  ;;  %v36_v15 = vld [vmem:[%s4134_s0 + $0x18] sm:$0xff] }
   0x7   :  { %2403 = vmatprep.subr.mxu0 %v2862_v1  ;;  %2458 = vmatprep.subr.mxu1 %v2862_v1 }
   0x8   :  { %2404 = vmatpush3.msra.mxu0 %v2925_v4  ;;  %2459 = vmatpush3.msra.mxu1 %v2925_v4 }
   0x9   :  { %2405 = vmatprep.subr.mxu0 %v2862_v1  ;;  %2460 = vmatprep.subr.mxu1 %v2862_v1 }
   0xa   :  { %2406 = vmatpush3.msra.mxu0 %v2934_v5  ;;  %2461 = vmatpush3.msra.mxu1 %v2934_v5 }
   0xb   :  { %2407 = vmatprep.subr.mxu0 %v2862_v1  ;;  %2462 = vmatprep.subr.mxu1 %v2862_v1 }
   0xc   :  { %2408 = vmatpush3.msra.mxu0 %v2943_v6  ;;  %2463 = vmatpush3.msra.mxu1 %v2943_v6 }
   0xd   :  { %2409 = vmatprep.subr.mxu0 %v2862_v1  ;;  %2464 = vmatprep.subr.mxu1 %v2862_v1 }
   0xe   :  { %2410 = vmatpush3.msra.mxu0 %v2952_v7  ;;  %2465 = vmatpush3.msra.mxu1 %v2952_v7 }
   0xf   :  { %2411 = vmatprep.subr.mxu0 %v2862_v1  ;;  %2413 = vmatprep.mubr.msk.f32.mxu0 %vm2863_vm2, %v2862_v1 }
  0x10   :  { %2412 = vmatpush3.msra.mxu0 %v2961_v8  ;;  %2466 = vmatprep.subr.mxu1 %v2862_v1 }
  0x11   :  { %2414 = vmatmul.mubr.msk.f32.vlgmr.msra.gmra.mxu0 %vm46_vm1, %v33_v9  ;;  %2467 = vmatpush3.msra.mxu1 %v2961_v8 }
  0x12   :  { %2468 = vmatprep.mubr.msk.f32.mxu1 %vm2863_vm2, %v2862_v1  ;;  %2507 = vmatprep.subr.mxu0 %v2862_v1 }
  0x13   :  { %2469 = vmatmul.mubr.msk.f32.vlgmr.msra.gmra.mxu1 %vm46_vm1, %v2013_v10  ;;  %2508 = vmatpush3.msk.msra.mxu0 %vm86_vm0, %v2898_v0 }
  0x14   :  { %2562 = vmatprep.subr.mxu1 %v2862_v1  ;;  %2416 = vmatprep.mubr.msk.f32.mxu0 %vm2863_vm2, %v2862_v1 }
  0x15   :  { %2563 = vmatpush3.msk.msra.mxu1 %vm86_vm0, %v2898_v0  ;;  %2417 = vmatmul.mubr.msk.f32.gmra.mxu0 %vm46_vm1, %v34_v11 }
  0x16   :  { %2471 = vmatprep.mubr.msk.f32.mxu1 %vm2863_vm2, %v2862_v1  ;;  %2419 = vmatprep.mubr.msk.f32.mxu0 %vm2863_vm2, %v2862_v1 }
  0x17   :  { %2472 = vmatmul.mubr.msk.f32.gmra.mxu1 %vm46_vm1, %v2014_v12  ;;  %2509 = vmatprep.subr.mxu0 %v2862_v1 }
  0x18   :  { %2474 = vmatprep.mubr.msk.f32.mxu1 %vm2863_vm2, %v2862_v1  ;;  %2510 = vmatpush3.msra.mxu0 %v2905_v2 }
  0x19   :  { %2420 = vmatmul.mubr.msk.f32.gmra.mxu0 %vm46_vm1, %v35_v13  ;;  %2564 = vmatprep.subr.mxu1 %v2862_v1 }
  0x1a   :  { %2565 = vmatpush3.msra.mxu1 %v2905_v2  ;;  %2422 = vmatprep.mubr.msk.f32.mxu0 %vm2863_vm2, %v2862_v1 }
  0x1b   :  { %10 = vsyncpa [#allocation3], 0  ;;  %2475 = vmatmul.mubr.msk.f32.gmra.mxu1 %vm46_vm1, %v2015_v14  ;;  %2511 = vmatprep.subr.mxu0 %v2862_v1  ;;  %v2016_v16 = vld [vmem:[%s4134_s0 + $0x80] sm:$0xff]  ;;  %v2017_v18 = vld [vmem:[%s4134_s0 + $0x88] sm:$0xff]  ;;  %vm866_vm3 = vcmask 261120   ;;  %vm903_vm4 = vcmask 254976  }
  0x1c   :  { %2477 = vmatprep.mubr.msk.f32.mxu1 %vm2863_vm2, %v2862_v1  ;;  %2512 = vmatpush3.msra.mxu0 %v2916_v3  ;;  %v37_v17 = vld [vmem:[%s4134_s0 + $0x20] sm:$0xff]  ;;  %v38_v19 = vld [vmem:[%s4134_s0 + $0x28] sm:$0xff]  ;;  %v2018_v20 = vld [vmem:[%s4134_s0 + $0x90] sm:$0xff]  ;;  %vm918_vm5 = vcmask 1041408   ;;  %vm1015_vm7 = vcmask 8192  }
  0x1d   :  { %2423 = vmatmul.mubr.msk.f32.gmra.mxu0 %vm46_vm1, %v36_v15  ;;  %2566 = vmatprep.subr.mxu1 %v2862_v1  ;;  %v39_v21 = vld [vmem:[%s4134_s0 + $0x30] sm:$0xff]  ;;  %v2019_v22 = vld [vmem:[%s4134_s0 + $0x98] sm:$0xff]  ;;  %v2020_v24 = vld [vmem:[%s4134_s0 + $0xa0] sm:$0xff] }
  0x1e   :  { %2425 = vmatprep.mubr.msk.f32.mxu0 %vm2863_vm2, %v2862_v1  ;;  %2567 = vmatpush3.msra.mxu1 %v2916_v3  ;;  %v40_v23 = vld [vmem:[%s4134_s0 + $0x38] sm:$0xff]  ;;  %v41_v25 = vld [vmem:[%s4134_s0 + $0x40] sm:$0xff]  ;;  %v2021_v26 = vld [vmem:[%s4134_s0 + $0xa8] sm:$0xff] }
  0x1f   :  { %2478 = vmatmul.mubr.msk.f32.gmra.mxu1 %vm46_vm1, %v2016_v16  ;;  %2513 = vmatprep.subr.mxu0 %v2862_v1  ;;  %v42_v27 = vld [vmem:[%s4134_s0 + $0x48] sm:$0xff]  ;;  %v2022_v28 = vld [vmem:[%s4134_s0 + $0xb0] sm:$0xff]  ;;  %v2023_v30 = vld [vmem:[%s4134_s0 + $0xb8] sm:$0xff] }
  0x20   :  { %2480 = vmatprep.mubr.msk.f32.mxu1 %vm2863_vm2, %v2862_v1  ;;  %2514 = vmatpush3.msra.mxu0 %v2925_v4  ;;  %v43_v29 = vld [vmem:[%s4134_s0 + $0x50] sm:$0xff]  ;;  %v44_v31 = vld [vmem:[%s4134_s0 + $0x58] sm:$0xff]  ;;  %v2024_v32 = vld [vmem:[%s4134_s0 + $0xc0] sm:$0xff] }
  0x21   :  { %2426 = vmatmul.mubr.msk.f32.gmra.mxu0 %vm46_vm1, %v37_v17  ;;  %2568 = vmatprep.subr.mxu1 %v2862_v1  ;;  %v45_v33 = vld [vmem:[%s4134_s0 + $0x60] sm:$0x3]  ;;  %v2025_v34 = vld [vmem:[%s4134_s0 + $0xc8] sm:$0x3]  ;;  %v2040_v35 = vld [vmem:[%s4134_s0 + $0xd0] sm:$0xff] }
  0x22   :  { %2428 = vmatprep.mubr.msk.f32.mxu0 %vm2863_vm2, %v2862_v1  ;;  %2569 = vmatpush3.msra.mxu1 %v2925_v4  ;;  %v2067_v36 = vld [vmem:[%s4134_s0 + $0x138] sm:$0xff]  ;;  %v2068_v38 = vld [vmem:[%s4134_s0 + $0x140] sm:$0xff]  ;;  %v2069_v40 = vld [vmem:[%s4134_s0 + $0x148] sm:$0xff] }
  0x23   :  { %2481 = vmatmul.mubr.msk.f32.gmra.mxu1 %vm46_vm1, %v2017_v18  ;;  %2515 = vmatprep.subr.mxu0 %v2862_v1  ;;  %v2041_v37 = vld [vmem:[%s4134_s0 + $0xd8] sm:$0xff]  ;;  %v2042_v39 = vld [vmem:[%s4134_s0 + $0xe0] sm:$0xff]  ;;  %v2043_v41 = vld [vmem:[%s4134_s0 + $0xe8] sm:$0xff] }
  0x24   :  { %2483 = vmatprep.mubr.msk.f32.mxu1 %vm2863_vm2, %v2862_v1  ;;  %2516 = vmatpush3.msra.mxu0 %v2934_v5  ;;  %v2070_v42 = vld [vmem:[%s4134_s0 + $0x150] sm:$0xff]  ;;  %v2071_v44 = vld [vmem:[%s4134_s0 + $0x158] sm:$0xff]  ;;  %v2072_v46 = vld [vmem:[%s4134_s0 + $0x160] sm:$0xff] }
  0x25   :  { %2429 = vmatmul.mubr.msk.f32.gmra.mxu0 %vm46_vm1, %v38_v19  ;;  %2570 = vmatprep.subr.mxu1 %v2862_v1  ;;  %v2044_v43 = vld [vmem:[%s4134_s0 + $0xf0] sm:$0xff]  ;;  %v2045_v45 = vld [vmem:[%s4134_s0 + $0xf8] sm:$0xff]  ;;  %v2046_v47 = vld [vmem:[%s4134_s0 + $0x100] sm:$0xff] }
  0x26   :  { %2431 = vmatprep.mubr.msk.f32.mxu0 %vm2863_vm2, %v2862_v1  ;;  %2571 = vmatpush3.msra.mxu1 %v2934_v5  ;;  %v2073_v48 = vld [vmem:[%s4134_s0 + $0x168] sm:$0xff]  ;;  %v2074_v50 = vld [vmem:[%s4134_s0 + $0x170] sm:$0xff]  ;;  %v2075_v52 = vld [vmem:[%s4134_s0 + $0x178] sm:$0xff] }
  0x27   :  { %2484 = vmatmul.mubr.msk.f32.gmra.mxu1 %vm46_vm1, %v2018_v20  ;;  %2517 = vmatprep.subr.mxu0 %v2862_v1  ;;  %v2047_v49 = vld [vmem:[%s4134_s0 + $0x108] sm:$0xff]  ;;  %v2048_v51 = vld [vmem:[%s4134_s0 + $0x110] sm:$0xff]  ;;  %v2049_v53 = vld [vmem:[%s4134_s0 + $0x118] sm:$0xff] }
  0x28   :  { %2486 = vmatprep.mubr.msk.f32.mxu1 %vm2863_vm2, %v2862_v1  ;;  %2518 = vmatpush3.msra.mxu0 %v2943_v6  ;;  %v2076_v54 = vld [vmem:[%s4134_s0 + $0x180] sm:$0xff]  ;;  %v2077_v56 = vld [vmem:[%s4134_s0 + $0x188] sm:$0xff]  ;;  %v2078_v58 = vld [vmem:[%s4134_s0 + $0x190] sm:$0xff] }
  0x29   :  { %2432 = vmatmul.mubr.msk.f32.gmra.mxu0 %vm46_vm1, %v39_v21  ;;  %2572 = vmatprep.subr.mxu1 %v2862_v1  ;;  %v2050_v55 = vld [vmem:[%s4134_s0 + $0x120] sm:$0xff]  ;;  %v2051_v57 = vld [vmem:[%s4134_s0 + $0x128] sm:$0xff]  ;;  %v2052_v59 = vld [vmem:[%s4134_s0 + $0x130] sm:$0x3] }
  0x2a   :  { %2434 = vmatprep.mubr.msk.f32.mxu0 %vm2863_vm2, %v2862_v1  ;;  %2573 = vmatpush3.msra.mxu1 %v2943_v6  ;;  %v2079_v60 = vld [vmem:[%s4134_s0 + $0x198] sm:$0x3]  ;;  %v2108_v61 = vld [vmem:[%s4134_s0 + $0x1a0] sm:$0xff]  ;;  %v2135_v62 = vld [vmem:[%s4134_s0 + $0x208] sm:$0xff] }
  0x2b   :  { %2487 = vmatmul.mubr.msk.f32.gmra.mxu1 %vm46_vm1, %v2019_v22  ;;  %2519 = vmatprep.subr.mxu0 %v2862_v1  ;;  %v2109_v63 = vld [vmem:[%s4134_s0 + $0x1a8] sm:$0xff]  ;;  %v2136_v9 = vld [vmem:[%s4134_s0 + $0x210] sm:$0xff]  ;;  %v2111_v11 = vld [vmem:[%s4134_s0 + $0x1b8] sm:$0xff] }
  0x2c   :  { %2489 = vmatprep.mubr.msk.f32.mxu1 %vm2863_vm2, %v2862_v1  ;;  %2520 = vmatpush3.msra.mxu0 %v2952_v7  ;;  %v2110_v10 = vld [vmem:[%s4134_s0 + $0x1b0] sm:$0xff]  ;;  %v2112_v12 = vld [vmem:[%s4134_s0 + $0x1c0] sm:$0xff]  ;;  %v2113_v13 = vld [vmem:[%s4134_s0 + $0x1c8] sm:$0xff] }
  0x2d   :  { %2435 = vmatmul.mubr.msk.f32.gmra.mxu0 %vm46_vm1, %v40_v23  ;;  %2574 = vmatprep.subr.mxu1 %v2862_v1  ;;  %v2114_v14 = vld [vmem:[%s4134_s0 + $0x1d0] sm:$0xff]  ;;  %v2115_v15 = vld [vmem:[%s4134_s0 + $0x1d8] sm:$0xff]  ;;  %v2116_v16 = vld [vmem:[%s4134_s0 + $0x1e0] sm:$0xff] }
  0x2e   :  { %2437 = vmatprep.mubr.msk.f32.mxu0 %vm2863_vm2, %v2862_v1  ;;  %2575 = vmatpush3.msra.mxu1 %v2952_v7  ;;  %v2117_v17 = vld [vmem:[%s4134_s0 + $0x1e8] sm:$0xff]  ;;  %v2144_v18 = vld [vmem:[%s4134_s0 + $0x250] sm:$0xff]  ;;  %v2145_v19 = vld [vmem:[%s4134_s0 + $0x258] sm:$0xff] }
  0x2f   :  { %2490 = vmatmul.mubr.msk.f32.gmra.mxu1 %vm46_vm1, %v2020_v24  ;;  %2521 = vmatprep.subr.mxu0 %v2862_v1  ;;  %v2119_v20 = vld [vmem:[%s4134_s0 + $0x1f8] sm:$0xff]  ;;  %v2146_v21 = vld [vmem:[%s4134_s0 + $0x260] sm:$0xff]  ;;  %v2147_v23 = vld [vmem:[%s4134_s0 + $0x268] sm:$0x3] }
  0x30   :  { %2492 = vmatprep.mubr.msk.f32.mxu1 %vm2863_vm2, %v2862_v1  ;;  %2522 = vmatpush3.msra.mxu0 %v2961_v8  ;;  %v2120_v22 = vld [vmem:[%s4134_s0 + $0x200] sm:$0x3]  ;;  %v2162_v24 = vld [vmem:[%s4134_s0 + $0x270] sm:$0xff] }
  0x31   :  { %2438 = vmatmul.mubr.msk.f32.gmra.mxu0 %vm46_vm1, %v41_v25  ;;  %2576 = vmatprep.subr.mxu1 %v2862_v1  ;;  %v2189_v25 = vld [vmem:[%s4134_s0 + $0x2d8] sm:$0xff] }
  0x32   :  { %2440 = vmatprep.mubr.msk.f32.mxu0 %vm2863_vm2, %v2862_v1  ;;  %2577 = vmatpush3.msra.mxu1 %v2961_v8 }
  0x33   :  { %2493 = vmatmul.mubr.msk.f32.gmra.mxu1 %vm46_vm1, %v2021_v26  ;;  %2617 = vmatprep.subr.mxu0 %v2862_v1  ;;  %v2163_v26 = vld [vmem:[%s4134_s0 + $0x278] sm:$0xff] }
  0x34   :  { %2495 = vmatprep.mubr.msk.f32.mxu1 %vm2863_vm2, %v2862_v1  ;;  %2672 = vmatprep.subr.mxu1 %v2862_v1 }
  0x35   :  { %2441 = vmatmul.mubr.msk.f32.gmra.mxu0 %vm46_vm1, %v42_v27  ;;  %v2190_v27 = vld [vmem:[%s4134_s0 + $0x2e0] sm:$0xff] }
  0x36   :  { %2443 = vmatprep.mubr.msk.f32.mxu0 %vm2863_vm2, %v2862_v1 }
  0x37   :  { %2496 = vmatmul.mubr.msk.f32.gmra.mxu1 %vm46_vm1, %v2022_v28  ;;  %v2164_v28 = vld [vmem:[%s4134_s0 + $0x280] sm:$0xff] }
  0x38   :  { %2498 = vmatprep.mubr.msk.f32.mxu1 %vm2863_vm2, %v2862_v1 }
  0x39   :  { %2444 = vmatmul.mubr.msk.f32.gmra.mxu0 %vm46_vm1, %v43_v29  ;;  %v2191_v29 = vld [vmem:[%s4134_s0 + $0x2e8] sm:$0xff] }
  0x3a   :  { %2446 = vmatprep.mubr.msk.f32.mxu0 %vm2863_vm2, %v2862_v1 }
  0x3b   :  { %2499 = vmatmul.mubr.msk.f32.gmra.mxu1 %vm46_vm1, %v2023_v30  ;;  %v2165_v30 = vld [vmem:[%s4134_s0 + $0x288] sm:$0xff] }
  0x3c   :  { %2501 = vmatprep.mubr.msk.f32.mxu1 %vm2863_vm2, %v2862_v1 }
  0x3d   :  { %2447 = vmatmul.mubr.msk.f32.gmra.mxu0 %vm46_vm1, %v44_v31  ;;  %v2192_v31 = vld [vmem:[%s4134_s0 + $0x2f0] sm:$0xff] }
  0x3e   :  { %2449 = vmatprep.mubr.msk.f32.mxu0 %vm2863_vm2, %v2862_v1 }
  0x3f   :  { %2502 = vmatmul.mubr.msk.f32.gmra.mxu1 %vm46_vm1, %v2024_v32  ;;  %v2166_v32 = vld [vmem:[%s4134_s0 + $0x290] sm:$0xff] }
  0x40   :  { %2504 = vmatprep.mubr.msk.f32.mxu1 %vm2863_vm2, %v2862_v1 }
  0x41   :  { %2450 = vmatmul.mubr.msk.f32.gmra.mxu0 %vm46_vm1, %v45_v33  ;;  %v2193_v33 = vld [vmem:[%s4134_s0 + $0x2f8] sm:$0xff] }
  0x42   :  { %2523 = vmatprep.mubr.msk.f32.mxu0 %vm2863_vm2, %v2862_v1 }
  0x43   :  { %2505 = vmatmul.mubr.msk.f32.gmra.mxu1 %vm46_vm1, %v2025_v34  ;;  %v2167_v34 = vld [vmem:[%s4134_s0 + $0x298] sm:$0xff] }
  0x44   :  { %2578 = vmatprep.mubr.msk.f32.mxu1 %vm2863_vm2, %v2862_v1 }
  0x45   :  { %2524 = vmatmul.mubr.msk.f32.vlgmr.msra.gmra.mxu0 %vm46_vm1, %v2040_v35  ;;  %v2194_v35 = vld [vmem:[%s4134_s0 + $0x300] sm:$0xff] }
  0x46   :  { %2618 = vmatpush3.msk.msra.mxu0 %vm86_vm0, %v2898_v0  ;;  %2526 = vmatprep.mubr.msk.f32.mxu0 %vm2863_vm2, %v2862_v1 }
  0x47   :  { %2579 = vmatmul.mubr.msk.f32.vlgmr.msra.gmra.mxu1 %vm46_vm1, %v2067_v36  ;;  %2619 = vmatprep.subr.mxu0 %v2862_v1  ;;  %v2168_v36 = vld [vmem:[%s4134_s0 + $0x2a0] sm:$0xff] }
  0x48   :  { %2673 = vmatpush3.msk.msra.mxu1 %vm86_vm0, %v2898_v0  ;;  %2581 = vmatprep.mubr.msk.f32.mxu1 %vm2863_vm2, %v2862_v1 }
  0x49   :  { %2527 = vmatmul.mubr.msk.f32.gmra.mxu0 %vm46_vm1, %v2041_v37  ;;  %2674 = vmatprep.subr.mxu1 %v2862_v1  ;;  %v2195_v37 = vld [vmem:[%s4134_s0 + $0x308] sm:$0xff] }
  0x4a   :  { %2529 = vmatprep.mubr.msk.f32.mxu0 %vm2863_vm2, %v2862_v1  ;;  %2620 = vmatpush3.msra.mxu0 %v2905_v2 }
  0x4b   :  { %2582 = vmatmul.mubr.msk.f32.gmra.mxu1 %vm46_vm1, %v2068_v38  ;;  %2621 = vmatprep.subr.mxu0 %v2862_v1  ;;  %v2169_v38 = vld [vmem:[%s4134_s0 + $0x2a8] sm:$0xff] }
  0x4c   :  { %2584 = vmatprep.mubr.msk.f32.mxu1 %vm2863_vm2, %v2862_v1  ;;  %2675 = vmatpush3.msra.mxu1 %v2905_v2 }
  0x4d   :  { %2530 = vmatmul.mubr.msk.f32.gmra.mxu0 %vm46_vm1, %v2042_v39  ;;  %2676 = vmatprep.subr.mxu1 %v2862_v1  ;;  %v2196_v39 = vld [vmem:[%s4134_s0 + $0x310] sm:$0xff] }
  0x4e   :  { %2532 = vmatprep.mubr.msk.f32.mxu0 %vm2863_vm2, %v2862_v1  ;;  %2622 = vmatpush3.msra.mxu0 %v2916_v3 }
  0x4f   :  { %2585 = vmatmul.mubr.msk.f32.gmra.mxu1 %vm46_vm1, %v2069_v40  ;;  %2623 = vmatprep.subr.mxu0 %v2862_v1  ;;  %v2170_v40 = vld [vmem:[%s4134_s0 + $0x2b0] sm:$0xff] }
  0x50   :  { %2587 = vmatprep.mubr.msk.f32.mxu1 %vm2863_vm2, %v2862_v1  ;;  %2677 = vmatpush3.msra.mxu1 %v2916_v3 }
  0x51   :  { %2533 = vmatmul.mubr.msk.f32.gmra.mxu0 %vm46_vm1, %v2043_v41  ;;  %2678 = vmatprep.subr.mxu1 %v2862_v1  ;;  %v2197_v41 = vld [vmem:[%s4134_s0 + $0x318] sm:$0xff] }
  0x52   :  { %2535 = vmatprep.mubr.msk.f32.mxu0 %vm2863_vm2, %v2862_v1  ;;  %2624 = vmatpush3.msra.mxu0 %v2925_v4 }
  0x53   :  { %2588 = vmatmul.mubr.msk.f32.gmra.mxu1 %vm46_vm1, %v2070_v42  ;;  %2625 = vmatprep.subr.mxu0 %v2862_v1  ;;  %v2171_v42 = vld [vmem:[%s4134_s0 + $0x2b8] sm:$0xff] }
  0x54   :  { %2590 = vmatprep.mubr.msk.f32.mxu1 %vm2863_vm2, %v2862_v1  ;;  %2679 = vmatpush3.msra.mxu1 %v2925_v4 }
  0x55   :  { %2536 = vmatmul.mubr.msk.f32.gmra.mxu0 %vm46_vm1, %v2044_v43  ;;  %2680 = vmatprep.subr.mxu1 %v2862_v1  ;;  %v2198_v43 = vld [vmem:[%s4134_s0 + $0x320] sm:$0xff] }
  0x56   :  { %2538 = vmatprep.mubr.msk.f32.mxu0 %vm2863_vm2, %v2862_v1  ;;  %2626 = vmatpush3.msra.mxu0 %v2934_v5 }
  0x57   :  { %2591 = vmatmul.mubr.msk.f32.gmra.mxu1 %vm46_vm1, %v2071_v44  ;;  %2627 = vmatprep.subr.mxu0 %v2862_v1 }
  0x58   :  { %2593 = vmatprep.mubr.msk.f32.mxu1 %vm2863_vm2, %v2862_v1  ;;  %2681 = vmatpush3.msra.mxu1 %v2934_v5 }
  0x59   :  { %2539 = vmatmul.mubr.msk.f32.gmra.mxu0 %vm46_vm1, %v2045_v45  ;;  %2682 = vmatprep.subr.mxu1 %v2862_v1  ;;  %v2172_v45 = vld [vmem:[%s4134_s0 + $0x2c0] sm:$0xff] }
  0x5a   :  { %2541 = vmatprep.mubr.msk.f32.mxu0 %vm2863_vm2, %v2862_v1  ;;  %2628 = vmatpush3.msra.mxu0 %v2943_v6 }
  0x5b   :  { %2594 = vmatmul.mubr.msk.f32.gmra.mxu1 %vm46_vm1, %v2072_v46  ;;  %2629 = vmatprep.subr.mxu0 %v2862_v1 }
  0x5c   :  { %2596 = vmatprep.mubr.msk.f32.mxu1 %vm2863_vm2, %v2862_v1  ;;  %2683 = vmatpush3.msra.mxu1 %v2943_v6 }
  0x5d   :  { %2542 = vmatmul.mubr.msk.f32.gmra.mxu0 %vm46_vm1, %v2046_v47  ;;  %2684 = vmatprep.subr.mxu1 %v2862_v1 }
  0x5e   :  { %2544 = vmatprep.mubr.msk.f32.mxu0 %vm2863_vm2, %v2862_v1  ;;  %2630 = vmatpush3.msra.mxu0 %v2952_v7 }
  0x5f   :  { %2597 = vmatmul.mubr.msk.f32.gmra.mxu1 %vm46_vm1, %v2073_v48  ;;  %2631 = vmatprep.subr.mxu0 %v2862_v1  ;;  %v2199_v48 = vld [vmem:[%s4134_s0 + $0x328] sm:$0xff] }
  0x60   :  { %2599 = vmatprep.mubr.msk.f32.mxu1 %vm2863_vm2, %v2862_v1  ;;  %2685 = vmatpush3.msra.mxu1 %v2952_v7 }
  0x61   :  { %2545 = vmatmul.mubr.msk.f32.gmra.mxu0 %vm46_vm1, %v2047_v49  ;;  %2686 = vmatprep.subr.mxu1 %v2862_v1 }
  0x62   :  { %2547 = vmatprep.mubr.msk.f32.mxu0 %vm2863_vm2, %v2862_v1  ;;  %2632 = vmatpush3.msra.mxu0 %v2961_v8 }
  0x63   :  { %2600 = vmatmul.mubr.msk.f32.gmra.mxu1 %vm46_vm1, %v2074_v50  ;;  %2727 = vmatprep.subr.mxu0 %v2862_v1 }
  0x64   :  { %2602 = vmatprep.mubr.msk.f32.mxu1 %vm2863_vm2, %v2862_v1  ;;  %2687 = vmatpush3.msra.mxu1 %v2961_v8 }
  0x65   :  { %2548 = vmatmul.mubr.msk.f32.gmra.mxu0 %vm46_vm1, %v2048_v51  ;;  %2782 = vmatprep.subr.mxu1 %v2862_v1  ;;  %v2173_v51 = vld [vmem:[%s4134_s0 + $0x2c8] sm:$0xff] }
  0x66   :  { %2550 = vmatprep.mubr.msk.f32.mxu0 %vm2863_vm2, %v2862_v1 }
  0x67   :  { %2603 = vmatmul.mubr.msk.f32.gmra.mxu1 %vm46_vm1, %v2075_v52 }
  0x68   :  { %2605 = vmatprep.mubr.msk.f32.mxu1 %vm2863_vm2, %v2862_v1 }
  0x69   :  { %2551 = vmatmul.mubr.msk.f32.gmra.mxu0 %vm46_vm1, %v2049_v53 }
  0x6a   :  { %2553 = vmatprep.mubr.msk.f32.mxu0 %vm2863_vm2, %v2862_v1 }
  0x6b   :  { %2606 = vmatmul.mubr.msk.f32.gmra.mxu1 %vm46_vm1, %v2076_v54  ;;  %v2200_v54 = vld [vmem:[%s4134_s0 + $0x330] sm:$0xff] }
  0x6c   :  { %2608 = vmatprep.mubr.msk.f32.mxu1 %vm2863_vm2, %v2862_v1 }
  0x6d   :  { %2554 = vmatmul.mubr.msk.f32.gmra.mxu0 %vm46_vm1, %v2050_v55 }
  0x6e   :  { %2556 = vmatprep.mubr.msk.f32.mxu0 %vm2863_vm2, %v2862_v1 }
  0x6f   :  { %2609 = vmatmul.mubr.msk.f32.gmra.mxu1 %vm46_vm1, %v2077_v56 }
  0x70   :  { %2611 = vmatprep.mubr.msk.f32.mxu1 %vm2863_vm2, %v2862_v1 }
  0x71   :  { %2557 = vmatmul.mubr.msk.f32.gmra.mxu0 %vm46_vm1, %v2051_v57  ;;  %v2174_v57 = vld [vmem:[%s4134_s0 + $0x2d0] sm:$0x3] }
  0x72   :  { %2559 = vmatprep.mubr.msk.f32.mxu0 %vm2863_vm2, %v2862_v1 }
  0x73   :  { %2612 = vmatmul.mubr.msk.f32.gmra.mxu1 %vm46_vm1, %v2078_v58 }
  0x74   :  { %2614 = vmatprep.mubr.msk.f32.mxu1 %vm2863_vm2, %v2862_v1 }
  0x75   :  { %2560 = vmatmul.mubr.msk.f32.gmra.mxu0 %vm46_vm1, %v2052_v59 }
  0x76   :  { %2633 = vmatprep.mubr.msk.f32.mxu0 %vm2863_vm2, %v2862_v1 }
  0x77   :  { %2615 = vmatmul.mubr.msk.f32.gmra.mxu1 %vm46_vm1, %v2079_v60  ;;  %v2201_v60 = vld [vmem:[%s4134_s0 + $0x338] sm:$0x3] }
  0x78   :  { %2688 = vmatprep.mubr.msk.f32.mxu1 %vm2863_vm2, %v2862_v1 }
  0x79   :  { %2634 = vmatmul.mubr.msk.f32.vlgmr.msra.gmra.mxu0 %vm46_vm1, %v2108_v61 }
  0x7a   :  { %2728 = vmatpush3.msk.msra.mxu0 %vm86_vm0, %v2898_v0  ;;  %2636 = vmatprep.mubr.msk.f32.mxu0 %vm2863_vm2, %v2862_v1 }
  0x7b   :  { %2689 = vmatmul.mubr.msk.f32.vlgmr.msra.gmra.mxu1 %vm46_vm1, %v2135_v62  ;;  %2729 = vmatprep.subr.mxu0 %v2862_v1 }
  0x7c   :  { %2783 = vmatpush3.msk.msra.mxu1 %vm86_vm0, %v2898_v0  ;;  %2691 = vmatprep.mubr.msk.f32.mxu1 %vm2863_vm2, %v2862_v1  ;;  %v2137_v0 = vld [vmem:[%s4134_s0 + $0x218] sm:$0xff] }
  0x7d   :  { %2637 = vmatmul.mubr.msk.f32.gmra.mxu0 %vm46_vm1, %v2109_v63  ;;  %2784 = vmatprep.subr.mxu1 %v2862_v1 }
  0x7e   :  { %2639 = vmatprep.mubr.msk.f32.mxu0 %vm2863_vm2, %v2862_v1  ;;  %2730 = vmatpush3.msra.mxu0 %v2905_v2 }
  0x7f   :  { %2692 = vmatmul.mubr.msk.f32.gmra.mxu1 %vm46_vm1, %v2136_v9  ;;  %2731 = vmatprep.subr.mxu0 %v2862_v1 }
  0x80   :  { %2694 = vmatprep.mubr.msk.f32.mxu1 %vm2863_vm2, %v2862_v1  ;;  %2785 = vmatpush3.msra.mxu1 %v2905_v2  ;;  %v2138_v2 = vld [vmem:[%s4134_s0 + $0x220] sm:$0xff] }
  0x81   :  { %2640 = vmatmul.mubr.msk.f32.gmra.mxu0 %vm46_vm1, %v2110_v10  ;;  %2786 = vmatprep.subr.mxu1 %v2862_v1 }
  0x82   :  { %2642 = vmatprep.mubr.msk.f32.mxu0 %vm2863_vm2, %v2862_v1  ;;  %2732 = vmatpush3.msra.mxu0 %v2916_v3 }
  0x83   :  { %2695 = vmatmul.mubr.msk.f32.gmra.mxu1 %vm46_vm1, %v2137_v0  ;;  %2733 = vmatprep.subr.mxu0 %v2862_v1 }
  0x84   :  { %2697 = vmatprep.mubr.msk.f32.mxu1 %vm2863_vm2, %v2862_v1  ;;  %2787 = vmatpush3.msra.mxu1 %v2916_v3  ;;  %v2139_v3 = vld [vmem:[%s4134_s0 + $0x228] sm:$0xff] }
  0x85   :  { %2643 = vmatmul.mubr.msk.f32.gmra.mxu0 %vm46_vm1, %v2111_v11  ;;  %2788 = vmatprep.subr.mxu1 %v2862_v1 }
  0x86   :  { %2645 = vmatprep.mubr.msk.f32.mxu0 %vm2863_vm2, %v2862_v1  ;;  %2734 = vmatpush3.msra.mxu0 %v2925_v4 }
  0x87   :  { %2698 = vmatmul.mubr.msk.f32.gmra.mxu1 %vm46_vm1, %v2138_v2  ;;  %2735 = vmatprep.subr.mxu0 %v2862_v1 }
  0x88   :  { %2700 = vmatprep.mubr.msk.f32.mxu1 %vm2863_vm2, %v2862_v1  ;;  %2789 = vmatpush3.msra.mxu1 %v2925_v4  ;;  %v2140_v4 = vld [vmem:[%s4134_s0 + $0x230] sm:$0xff] }
  0x89   :  { %2646 = vmatmul.mubr.msk.f32.gmra.mxu0 %vm46_vm1, %v2112_v12  ;;  %2790 = vmatprep.subr.mxu1 %v2862_v1 }
  0x8a   :  { %2648 = vmatprep.mubr.msk.f32.mxu0 %vm2863_vm2, %v2862_v1  ;;  %2736 = vmatpush3.msra.mxu0 %v2934_v5 }
  0x8b   :  { %2701 = vmatmul.mubr.msk.f32.gmra.mxu1 %vm46_vm1, %v2139_v3  ;;  %2737 = vmatprep.subr.mxu0 %v2862_v1 }
  0x8c   :  { %2703 = vmatprep.mubr.msk.f32.mxu1 %vm2863_vm2, %v2862_v1  ;;  %2791 = vmatpush3.msra.mxu1 %v2934_v5  ;;  %v2141_v5 = vld [vmem:[%s4134_s0 + $0x238] sm:$0xff] }
  0x8d   :  { %2649 = vmatmul.mubr.msk.f32.gmra.mxu0 %vm46_vm1, %v2113_v13  ;;  %2792 = vmatprep.subr.mxu1 %v2862_v1 }
  0x8e   :  { %2651 = vmatprep.mubr.msk.f32.mxu0 %vm2863_vm2, %v2862_v1  ;;  %2738 = vmatpush3.msra.mxu0 %v2943_v6 }
  0x8f   :  { %2704 = vmatmul.mubr.msk.f32.gmra.mxu1 %vm46_vm1, %v2140_v4  ;;  %2739 = vmatprep.subr.mxu0 %v2862_v1 }
  0x90   :  { %2706 = vmatprep.mubr.msk.f32.mxu1 %vm2863_vm2, %v2862_v1  ;;  %2793 = vmatpush3.msra.mxu1 %v2943_v6  ;;  %v2142_v6 = vld [vmem:[%s4134_s0 + $0x240] sm:$0xff] }
  0x91   :  { %2652 = vmatmul.mubr.msk.f32.gmra.mxu0 %vm46_vm1, %v2114_v14  ;;  %2794 = vmatprep.subr.mxu1 %v2862_v1 }
  0x92   :  { %2654 = vmatprep.mubr.msk.f32.mxu0 %vm2863_vm2, %v2862_v1  ;;  %2740 = vmatpush3.msra.mxu0 %v2952_v7 }
  0x93   :  { %2707 = vmatmul.mubr.msk.f32.gmra.mxu1 %vm46_vm1, %v2141_v5  ;;  %2741 = vmatprep.subr.mxu0 %v2862_v1 }
  0x94   :  { %2709 = vmatprep.mubr.msk.f32.mxu1 %vm2863_vm2, %v2862_v1  ;;  %2795 = vmatpush3.msra.mxu1 %v2952_v7  ;;  %v2143_v7 = vld [vmem:[%s4134_s0 + $0x248] sm:$0xff] }
  0x95   :  { %2655 = vmatmul.mubr.msk.f32.gmra.mxu0 %vm46_vm1, %v2115_v15  ;;  %2796 = vmatprep.subr.mxu1 %v2862_v1 }
  0x96   :  { %2657 = vmatprep.mubr.msk.f32.mxu0 %vm2863_vm2, %v2862_v1  ;;  %2742 = vmatpush3.msra.mxu0 %v2961_v8 }
  0x97   :  { %2710 = vmatmul.mubr.msk.f32.gmra.mxu1 %vm46_vm1, %v2142_v6 }
  0x98   :  { %2712 = vmatprep.mubr.msk.f32.mxu1 %vm2863_vm2, %v2862_v1  ;;  %2797 = vmatpush3.msra.mxu1 %v2961_v8  ;;  %v2118_v8 = vld [vmem:[%s4134_s0 + $0x1f0] sm:$0xff] }
  0x99   :  { %2658 = vmatmul.mubr.msk.f32.gmra.mxu0 %vm46_vm1, %v2116_v16 }
  0x9a   :  { %2660 = vmatprep.mubr.msk.f32.mxu0 %vm2863_vm2, %v2862_v1 }
  0x9b   :  { %2713 = vmatmul.mubr.msk.f32.gmra.mxu1 %vm46_vm1, %v2143_v7 }
  0x9c   :  { %2715 = vmatprep.mubr.msk.f32.mxu1 %vm2863_vm2, %v2862_v1 }
  0x9d   :  { %2661 = vmatmul.mubr.msk.f32.gmra.mxu0 %vm46_vm1, %v2117_v17 }
  0x9e   :  { %2663 = vmatprep.mubr.msk.f32.mxu0 %vm2863_vm2, %v2862_v1 }
  0x9f   :  { %2716 = vmatmul.mubr.msk.f32.gmra.mxu1 %vm46_vm1, %v2144_v18 }
  0xa0   :  { %2718 = vmatprep.mubr.msk.f32.mxu1 %vm2863_vm2, %v2862_v1 }
  0xa1   :  { %2664 = vmatmul.mubr.msk.f32.gmra.mxu0 %vm46_vm1, %v2118_v8 }
  0xa2   :  { %2666 = vmatprep.mubr.msk.f32.mxu0 %vm2863_vm2, %v2862_v1 }
  0xa3   :  { %2719 = vmatmul.mubr.msk.f32.gmra.mxu1 %vm46_vm1, %v2145_v19 }
  0xa4   :  { %2721 = vmatprep.mubr.msk.f32.mxu1 %vm2863_vm2, %v2862_v1 }
  0xa5   :  { %2667 = vmatmul.mubr.msk.f32.gmra.mxu0 %vm46_vm1, %v2119_v20 }
  0xa6   :  { %2669 = vmatprep.mubr.msk.f32.mxu0 %vm2863_vm2, %v2862_v1 }
  0xa7   :  { %2722 = vmatmul.mubr.msk.f32.gmra.mxu1 %vm46_vm1, %v2146_v21 }
  0xa8   :  { %2724 = vmatprep.mubr.msk.f32.mxu1 %vm2863_vm2, %v2862_v1 }
  0xa9   :  { %2670 = vmatmul.mubr.msk.f32.gmra.mxu0 %vm46_vm1, %v2120_v22 }
  0xaa   :  { %2743 = vmatprep.mubr.msk.f32.mxu0 %vm2863_vm2, %v2862_v1 }
  0xab   :  { %2725 = vmatmul.mubr.msk.f32.gmra.mxu1 %vm46_vm1, %v2147_v23 }
  0xac   :  { %2798 = vmatprep.mubr.msk.f32.mxu1 %vm2863_vm2, %v2862_v1 }
  0xad   :  { %2744 = vmatmul.mubr.msk.f32.vlgmr.msra.gmra.mxu0 %vm46_vm1, %v2162_v24 }
  0xae   :  { %2746 = vmatprep.mubr.msk.f32.mxu0 %vm2863_vm2, %v2862_v1 }
  0xaf   :  { %2799 = vmatmul.mubr.msk.f32.vlgmr.msra.gmra.mxu1 %vm46_vm1, %v2189_v25 }
  0xb0   :  { %2801 = vmatprep.mubr.msk.f32.mxu1 %vm2863_vm2, %v2862_v1 }
  0xb1   :  { %2747 = vmatmul.mubr.msk.f32.gmra.mxu0 %vm46_vm1, %v2163_v26 }
  0xb2   :  { %2749 = vmatprep.mubr.msk.f32.mxu0 %vm2863_vm2, %v2862_v1 }
  0xb3   :  { %2802 = vmatmul.mubr.msk.f32.gmra.mxu1 %vm46_vm1, %v2190_v27 }
  0xb4   :  { %2804 = vmatprep.mubr.msk.f32.mxu1 %vm2863_vm2, %v2862_v1 }
  0xb5   :  { %2750 = vmatmul.mubr.msk.f32.gmra.mxu0 %vm46_vm1, %v2164_v28 }
  0xb6   :  { %2752 = vmatprep.mubr.msk.f32.mxu0 %vm2863_vm2, %v2862_v1 }
  0xb7   :  { %2805 = vmatmul.mubr.msk.f32.gmra.mxu1 %vm46_vm1, %v2191_v29 }
  0xb8   :  { %2807 = vmatprep.mubr.msk.f32.mxu1 %vm2863_vm2, %v2862_v1 }
  0xb9   :  { %2753 = vmatmul.mubr.msk.f32.gmra.mxu0 %vm46_vm1, %v2165_v30 }
  0xba   :  { %2755 = vmatprep.mubr.msk.f32.mxu0 %vm2863_vm2, %v2862_v1 }
  0xbb   :  { %2808 = vmatmul.mubr.msk.f32.gmra.mxu1 %vm46_vm1, %v2192_v31 }
  0xbc   :  { %2810 = vmatprep.mubr.msk.f32.mxu1 %vm2863_vm2, %v2862_v1 }
  0xbd   :  { %2756 = vmatmul.mubr.msk.f32.gmra.mxu0 %vm46_vm1, %v2166_v32 }
  0xbe   :  { %2758 = vmatprep.mubr.msk.f32.mxu0 %vm2863_vm2, %v2862_v1 }
  0xbf   :  { %2811 = vmatmul.mubr.msk.f32.gmra.mxu1 %vm46_vm1, %v2193_v33 }
  0xc0   :  { %2813 = vmatprep.mubr.msk.f32.mxu1 %vm2863_vm2, %v2862_v1 }
  0xc1   :  { %2759 = vmatmul.mubr.msk.f32.gmra.mxu0 %vm46_vm1, %v2167_v34 }
  0xc2   :  { %2761 = vmatprep.mubr.msk.f32.mxu0 %vm2863_vm2, %v2862_v1 }
  0xc3   :  { %2814 = vmatmul.mubr.msk.f32.gmra.mxu1 %vm46_vm1, %v2194_v35 }
  0xc4   :  { %2816 = vmatprep.mubr.msk.f32.mxu1 %vm2863_vm2, %v2862_v1 }
  0xc5   :  { %2762 = vmatmul.mubr.msk.f32.gmra.mxu0 %vm46_vm1, %v2168_v36 }
  0xc6   :  { %2764 = vmatprep.mubr.msk.f32.mxu0 %vm2863_vm2, %v2862_v1 }
  0xc7   :  { %2817 = vmatmul.mubr.msk.f32.gmra.mxu1 %vm46_vm1, %v2195_v37 }
  0xc8   :  { %2819 = vmatprep.mubr.msk.f32.mxu1 %vm2863_vm2, %v2862_v1 }
  0xc9   :  { %2765 = vmatmul.mubr.msk.f32.gmra.mxu0 %vm46_vm1, %v2169_v38 }
  0xca   :  { %2767 = vmatprep.mubr.msk.f32.mxu0 %vm2863_vm2, %v2862_v1 }
  0xcb   :  { %2820 = vmatmul.mubr.msk.f32.gmra.mxu1 %vm46_vm1, %v2196_v39 }
  0xcc   :  { %2822 = vmatprep.mubr.msk.f32.mxu1 %vm2863_vm2, %v2862_v1 }
  0xcd   :  { %2768 = vmatmul.mubr.msk.f32.gmra.mxu0 %vm46_vm1, %v2170_v40 }
  0xce   :  { %2770 = vmatprep.mubr.msk.f32.mxu0 %vm2863_vm2, %v2862_v1 }
  0xcf   :  { %2823 = vmatmul.mubr.msk.f32.gmra.mxu1 %vm46_vm1, %v2197_v41  ;;  %v3752_v41 = vld [vmem:[%s4136_s2] ss:$0 sm:$0xff] }
  0xd0   :  { %2825 = vmatprep.mubr.msk.f32.mxu1 %vm2863_vm2, %v2862_v1 }
  0xd1   :  { %v3657_v44 = vpop.f32.mrf.mxu0  ;;  %2771 = vmatmul.mubr.msk.f32.gmra.mxu0 %vm46_vm1, %v2171_v42 }
  0xd2   :  { %2773 = vmatprep.mubr.msk.f32.mxu0 %vm2863_vm2, %v2862_v1 }
  0xd3   :  { %v3665_v46 = vpop.f32.mrf.mxu1  ;;  %v2415_v47 = vpop.f32.mrf.mxu0  ;;  %2826 = vmatmul.mubr.msk.f32.gmra.mxu1 %vm46_vm1, %v2198_v43 }
  0xd4   :  { %2828 = vmatprep.mubr.msk.f32.mxu1 %vm2863_vm2, %v2862_v1  ;;  %v403_v37 = vmax.f32 %v3657_v44, %v3665_v46 }
  0xd5   :  { %v2470_v49 = vpop.f32.mrf.mxu1  ;;  %v3673_v50 = vpop.f32.mrf.mxu0  ;;  %2774 = vmatmul.mubr.msk.f32.gmra.mxu0 %vm46_vm1, %v2172_v45 }
  0xd6   :  { %2776 = vmatprep.mubr.msk.f32.mxu0 %vm2863_vm2, %v2862_v1 }
  0xd7   :  { %v3681_v52 = vpop.f32.mrf.mxu1  ;;  %v2418_v53 = vpop.f32.mrf.mxu0  ;;  %2829 = vmatmul.mubr.msk.f32.gmra.mxu1 %vm46_vm1, %v2199_v48 }
  0xd8   :  { %2831 = vmatprep.mubr.msk.f32.mxu1 %vm2863_vm2, %v2862_v1  ;;  %v404_v45 = vmax.f32 %v3673_v50, %v3681_v52 }
  0xd9   :  { %v2473_v55 = vpop.f32.mrf.mxu1  ;;  %v3689_v56 = vpop.f32.mrf.mxu0  ;;  %2777 = vmatmul.mubr.msk.f32.gmra.mxu0 %vm46_vm1, %v2173_v51 }
  0xda   :  { %2779 = vmatprep.mubr.msk.f32.mxu0 %vm2863_vm2, %v2862_v1  ;;  %v3765_v55 = vld [vmem:[%s4137_s3] sm:$0xff] }
  0xdb   :  { %v3697_v58 = vpop.f32.mrf.mxu1  ;;  %v2421_v59 = vpop.f32.mrf.mxu0  ;;  %2832 = vmatmul.mubr.msk.f32.gmra.mxu1 %vm46_vm1, %v2200_v54  ;;  %v3760_v54 = vld [vmem:[%s4137_s3 + $0x68] sm:$0xff] }
  0xdc   :  { %2834 = vmatprep.mubr.msk.f32.mxu1 %vm2863_vm2, %v2862_v1  ;;  %v405_v50 = vmax.f32 %v3689_v56, %v3697_v58  ;;  %v3777_v56 = vld [vmem:[%s4137_s3 + $0x70] sm:$0xff]  ;;  %v3782_v58 = vld [vmem:[%s4137_s3 + $0x8] sm:$0xff] }
  0xdd   :  { %v2476_v61 = vpop.f32.mrf.mxu1  ;;  %v3705_v62 = vpop.f32.mrf.mxu0  ;;  %2780 = vmatmul.mubr.msk.f32.gmra.mxu0 %vm46_vm1, %v2174_v57 }
  0xdf   :  { %v3708_v63 = vpop.f32.mrf.mxu1  ;;  %v2424_v9 = vpop.f32.mrf.mxu0  ;;  %2835 = vmatmul.mubr.msk.f32.gmra.mxu1 %vm46_vm1, %v2201_v60 }
  0xe1   :  { %v2479_v10 = vpop.f32.mrf.mxu1  ;;  %v3711_v0 = vpop.f32.mrf.mxu0 }
  0xe3   :  { %v3713_v11 = vpop.f32.mrf.mxu1  ;;  %v2427_v1 = vpop.f32.mrf.mxu0 }
  0xe5   :  { %v2482_v2 = vpop.f32.mrf.mxu1  ;;  %v3715_v12 = vpop.f32.mrf.mxu0 }
  0xe6   :  { %v406_v2 = vmax.f32 %v3705_v62, %v3708_v63 }
  0xe7   :  { %v3717_v3 = vpop.f32.mrf.mxu1  ;;  %v2430_v13 = vpop.f32.mrf.mxu0 }
  0xe9   :  { %v2485_v4 = vpop.f32.mrf.mxu1  ;;  %v3719_v14 = vpop.f32.mrf.mxu0 }
  0xeb   :  { %v3721_v5 = vpop.f32.mrf.mxu1  ;;  %v2433_v15 = vpop.f32.mrf.mxu0 }
  0xed   :  { %v2488_v6 = vpop.f32.mrf.mxu1  ;;  %v3723_v16 = vpop.f32.mrf.mxu0 }
  0xef   :  { %v3725_v7 = vpop.f32.mrf.mxu1  ;;  %v2436_v17 = vpop.f32.mrf.mxu0 }
  0xf1   :  { %v2491_v18 = vpop.f32.mrf.mxu1  ;;  %v3727_v8 = vpop.f32.mrf.mxu0 }
  0xf3   :  { %v3729_v19 = vpop.f32.mrf.mxu1  ;;  %v2439_v20 = vpop.f32.mrf.mxu0 }
  0xf5   :  { %v2494_v21 = vpop.f32.mrf.mxu1  ;;  %v3731_v22 = vpop.f32.mrf.mxu0 }
  0xf7   :  { %v3733_v23 = vpop.f32.mrf.mxu1  ;;  %v2442_v24 = vpop.f32.mrf.mxu0 }
  0xf9   :  { %v2497_v25 = vpop.f32.mrf.mxu1  ;;  %v3735_v26 = vpop.f32.mrf.mxu0 }
  0xfb   :  { %v3737_v27 = vpop.f32.mrf.mxu1  ;;  %v2445_v28 = vpop.f32.mrf.mxu0 }
  0xfc   :  { %v407_v28 = vmax.f32 %v3711_v0, %v3713_v11 }
  0xfd   :  { %v2500_v29 = vpop.f32.mrf.mxu1  ;;  %v3739_v30 = vpop.f32.mrf.mxu0 }
  0xff   :  { %v3741_v31 = vpop.f32.mrf.mxu1  ;;  %v2448_v32 = vpop.f32.mrf.mxu0 }
 0x101   :  { %v2503_v33 = vpop.f32.mrf.mxu1  ;;  %v3743_v34 = vpop.f32.mrf.mxu0 }
 0x102   :  { %v3794_v33 = vld [vmem:[%s4137_s3 + $0x78] sm:$0xff] }
 0x103   :  { %v3745_v35 = vpop.f32.mrf.mxu1  ;;  %v2451_v36 = vpop.f32.mrf.mxu0 }
 0x104   :  { %v3799_v36 = vld [vmem:[%s4137_s3 + $0x10] sm:$0xff] }
 0x105   :  { %v2506_v38 = vpop.f32.mrf.mxu1  ;;  %v535_v39 = vpop.f32.mrf.mxu0 }
 0x106   :  { %v599_v40 = vmax.f32 %v403_v37, %v535_v39 }
 0x107   :  { %v731_v42 = vpop.f32.mrf.mxu1  ;;  %v2525_v43 = vpop.f32.mrf.mxu0 }
 0x108   :  { %v795_v47 = vmax.f32 %v599_v40, %v731_v42 }
 0x109   :  { %v2580_v48 = vpop.f32.mrf.mxu1  ;;  %v540_v49 = vpop.f32.mrf.mxu0 }
 0x10a   :  { %v814_v51 = vadd.f32 %v3752_v41, %v795_v47  ;;  %v600_v53 = vmax.f32 %v404_v45, %v540_v49  ;;  %v408_v48 = vmax.f32 %v3715_v12, %v3717_v3 }
 0x10b   :  { %v736_v44 = vpop.f32.mrf.mxu1  ;;  %v2528_v46 = vpop.f32.mrf.mxu0 }
 0x10c   :  { %v827_v52 = vmax.f32 %v814_v51, 0.0  ;;  %v796_v57 = vmax.f32 %v600_v53, %v736_v44  ;;  %v3811_v53 = vld [vmem:[%s4137_s3 + $0x80] sm:$0xff]  ;;  %v3816_v44 = vld [vmem:[%s4137_s3 + $0x18] sm:$0xff] }
 0x10d   :  { %v2583_v59 = vpop.f32.mrf.mxu1  ;;  %v545_v60 = vpop.f32.mrf.mxu0 }
 0x10e   :  { %v815_v61 = vadd.f32 %v3752_v41, %v796_v57  ;;  %v601_v9 = vmax.f32 %v405_v50, %v545_v60  ;;  %v941_v10 = vmul.f32 %v3760_v54, %v827_v52  ;;  %v853_v1 = vmul.f32 %v3765_v55, %v827_v52 }
 0x10f   :  { %v741_v13 = vpop.f32.mrf.mxu1  ;;  %v2531_v4 = vpop.f32.mrf.mxu0 }
 0x110   :  { %v828_v15 = vmax.f32 %v815_v61, 0.0  ;;  %v797_v6 = vmax.f32 %v601_v9, %v741_v13  ;;  %v954_v17 = vsel %vm866_vm3, %v941_v10, 0.0  ;;  %v867_v18 = vsel %vm866_vm3, %v853_v1, 0.0  ;;  %v3828_v13 = vld [vmem:[%s4137_s3 + $0x88] sm:$0xff]  ;;  %v3833_v4 = vld [vmem:[%s4137_s3 + $0x20] sm:$0xff] }
 0x111   :  { %v2586_v20 = vpop.f32.mrf.mxu1  ;;  %955 = vadd.xlane.f32.xlu1 %v954_v17  ;;  %868 = vadd.xlane.f32.xlu0 %v867_v18  ;;  %v550_v62 = vpop.f32.mrf.mxu0  ;;  %v409_v10 = vmax.f32 %v3719_v14, %v3721_v5 }
 0x112   :  { %v816_v63 = vadd.f32 %v3752_v41, %v797_v6  ;;  %v602_v21 = vmax.f32 %v406_v2, %v550_v62  ;;  %v942_v24 = vmul.f32 %v3777_v56, %v828_v15  ;;  %v854_v25 = vmul.f32 %v3782_v58, %v828_v15 }
 0x113   :  { %v746_v29 = vpop.f32.mrf.mxu1  ;;  %v2534_v32 = vpop.f32.mrf.mxu0 }
 0x114   :  { %v829_v37 = vmax.f32 %v816_v63, 0.0  ;;  %v798_v38 = vmax.f32 %v602_v21, %v746_v29  ;;  %v957_v39 = vsel %vm866_vm3, %v942_v24, 0.0  ;;  %v870_v40 = vsel %vm866_vm3, %v854_v25, 0.0  ;;  %v3845_v29 = vld [vmem:[%s4137_s3 + $0x90] sm:$0xff]  ;;  %v3850_v32 = vld [vmem:[%s4137_s3 + $0x28] sm:$0xff] }
 0x115   :  { %v2589_v42 = vpop.f32.mrf.mxu1  ;;  %958 = vadd.xlane.f32.xlu1 %v957_v39  ;;  %871 = vadd.xlane.f32.xlu0 %v870_v40  ;;  %v555_v0 = vpop.f32.mrf.mxu0  ;;  %v410_v24 = vmax.f32 %v3723_v16, %v3725_v7 }
 0x116   :  { %v817_v11 = vadd.f32 %v3752_v41, %v798_v38  ;;  %v603_v43 = vmax.f32 %v407_v28, %v555_v0  ;;  %v943_v45 = vmul.f32 %v3794_v33, %v829_v37  ;;  %v855_v47 = vmul.f32 %v3799_v36, %v829_v37 }
 0x117   :  { %v751_v49 = vpop.f32.mrf.mxu1  ;;  %v2537_v51 = vpop.f32.mrf.mxu0 }
 0x118   :  { %v830_v46 = vmax.f32 %v817_v11, 0.0  ;;  %v799_v50 = vmax.f32 %v603_v43, %v751_v49  ;;  %v960_v52 = vsel %vm866_vm3, %v943_v45, 0.0  ;;  %v873_v57 = vsel %vm866_vm3, %v855_v47, 0.0  ;;  %v3862_v49 = vld [vmem:[%s4137_s3 + $0x98] sm:$0xff]  ;;  %v3867_v51 = vld [vmem:[%s4137_s3 + $0x30] sm:$0xff] }
 0x119   :  { %v2592_v59 = vpop.f32.mrf.mxu1  ;;  %961 = vadd.xlane.f32.xlu1 %v960_v52  ;;  %874 = vadd.xlane.f32.xlu0 %v873_v57  ;;  %v560_v12 = vpop.f32.mrf.mxu0  ;;  %v411_v45 = vmax.f32 %v3727_v8, %v3729_v19 }
 0x11a   :  { %v818_v3 = vadd.f32 %v3752_v41, %v799_v50  ;;  %v604_v60 = vmax.f32 %v408_v48, %v560_v12  ;;  %v944_v61 = vmul.f32 %v3811_v53, %v830_v46  ;;  %v856_v9 = vmul.f32 %v3816_v44, %v830_v46 }
 0x11b   :  { %v756_v1 = vpop.f32.mrf.mxu1  ;;  %v2540_v2 = vpop.f32.mrf.mxu0 }
 0x11c   :  { %v831_v15 = vmax.f32 %v818_v3, 0.0  ;;  %v800_v6 = vmax.f32 %v604_v60, %v756_v1  ;;  %v963_v17 = vsel %vm866_vm3, %v944_v61, 0.0  ;;  %v876_v18 = vsel %vm866_vm3, %v856_v9, 0.0  ;;  %v3879_v1 = vld [vmem:[%s4137_s3 + $0xa0] sm:$0xff]  ;;  %v3884_v2 = vld [vmem:[%s4137_s3 + $0x38] sm:$0xff] }
 0x11d   :  { %v2595_v20 = vpop.f32.mrf.mxu1  ;;  %964 = vadd.xlane.f32.xlu1 %v963_v17  ;;  %877 = vadd.xlane.f32.xlu0 %v876_v18  ;;  %v565_v14 = vpop.f32.mrf.mxu0  ;;  %v412_v61 = vmax.f32 %v3731_v22, %v3733_v23 }
 0x11e   :  { %v819_v5 = vadd.f32 %v3752_v41, %v800_v6  ;;  %v605_v62 = vmax.f32 %v409_v10, %v565_v14  ;;  %v945_v63 = vmul.f32 %v3828_v13, %v831_v15  ;;  %v857_v21 = vmul.f32 %v3833_v4, %v831_v15 }
 0x11f   :  { %v761_v25 = vpop.f32.mrf.mxu1  ;;  %v2543_v28 = vpop.f32.mrf.mxu0 }
 0x120   :  { %v832_v37 = vmax.f32 %v819_v5, 0.0  ;;  %v801_v38 = vmax.f32 %v605_v62, %v761_v25  ;;  %v966_v39 = vsel %vm866_vm3, %v945_v63, 0.0  ;;  %v879_v40 = vsel %vm866_vm3, %v857_v21, 0.0  ;;  %v3896_v25 = vld [vmem:[%s4137_s3 + $0xa8] sm:$0xff]  ;;  %v3901_v28 = vld [vmem:[%s4137_s3 + $0x40] sm:$0xff] }
 0x121   :  { %v2598_v42 = vpop.f32.mrf.mxu1  ;;  %967 = vadd.xlane.f32.xlu1 %v966_v39  ;;  %880 = vadd.xlane.f32.xlu0 %v879_v40  ;;  %v570_v16 = vpop.f32.mrf.mxu0  ;;  %v413_v63 = vmax.f32 %v3735_v26, %v3737_v27 }
 0x122   :  { %v820_v7 = vadd.f32 %v3752_v41, %v801_v38  ;;  %v606_v0 = vmax.f32 %v410_v24, %v570_v16  ;;  %v946_v11 = vmul.f32 %v3845_v29, %v832_v37  ;;  %v858_v43 = vmul.f32 %v3850_v32, %v832_v37 }
 0x123   :  { %v766_v47 = vpop.f32.mrf.mxu1  ;;  %v2546_v48 = vpop.f32.mrf.mxu0 }
 0x124   :  { %v833_v46 = vmax.f32 %v820_v7, 0.0  ;;  %v802_v50 = vmax.f32 %v606_v0, %v766_v47  ;;  %v969_v52 = vsel %vm866_vm3, %v946_v11, 0.0  ;;  %v882_v57 = vsel %vm866_vm3, %v858_v43, 0.0  ;;  %v3913_v47 = vld [vmem:[%s4137_s3 + $0xb0] sm:$0xff]  ;;  %v3918_v48 = vld [vmem:[%s4137_s3 + $0x48] sm:$0xff] }
 0x125   :  { %v2601_v59 = vpop.f32.mrf.mxu1  ;;  %970 = vadd.xlane.f32.xlu1 %v969_v52  ;;  %883 = vadd.xlane.f32.xlu0 %v882_v57  ;;  %v575_v8 = vpop.f32.mrf.mxu0  ;;  %v414_v11 = vmax.f32 %v3739_v30, %v3741_v31 }
 0x126   :  { %v821_v19 = vadd.f32 %v3752_v41, %v802_v50  ;;  %v607_v12 = vmax.f32 %v411_v45, %v575_v8  ;;  %v947_v3 = vmul.f32 %v3862_v49, %v833_v46  ;;  %v859_v60 = vmul.f32 %v3867_v51, %v833_v46 }
 0x127   :  { %v771_v9 = vpop.f32.mrf.mxu1  ;;  %v2549_v10 = vpop.f32.mrf.mxu0 }
 0x128   :  { %v834_v15 = vmax.f32 %v821_v19, 0.0  ;;  %v803_v6 = vmax.f32 %v607_v12, %v771_v9  ;;  %v972_v17 = vsel %vm866_vm3, %v947_v3, 0.0  ;;  %v885_v18 = vsel %vm866_vm3, %v859_v60, 0.0  ;;  %v3930_v9 = vld [vmem:[%s4137_s3 + $0xb8] sm:$0xff]  ;;  %v3935_v10 = vld [vmem:[%s4137_s3 + $0x50] sm:$0xff] }
 0x129   :  { %v2604_v20 = vpop.f32.mrf.mxu1  ;;  %973 = vadd.xlane.f32.xlu1 %v972_v17  ;;  %886 = vadd.xlane.f32.xlu0 %v885_v18  ;;  %v580_v22 = vpop.f32.mrf.mxu0  ;;  %v415_v3 = vmax.f32 %v3743_v34, %v3745_v35  ;;  %4143 = vst [vmem:[#allocation5_spill] sm:$0xff] %v3930_v9 }
 0x12a   :  { %v822_v23 = vadd.f32 %v3752_v41, %v803_v6  ;;  %v608_v14 = vmax.f32 %v412_v61, %v580_v22  ;;  %v948_v5 = vmul.f32 %v3879_v1, %v834_v15  ;;  %v860_v62 = vmul.f32 %v3884_v2, %v834_v15 }
 0x12b   :  { %v776_v21 = vpop.f32.mrf.mxu1  ;;  %v2552_v24 = vpop.f32.mrf.mxu0 }
 0x12c   :  { %v835_v37 = vmax.f32 %v822_v23, 0.0  ;;  %v804_v38 = vmax.f32 %v608_v14, %v776_v21  ;;  %v975_v39 = vsel %vm866_vm3, %v948_v5, 0.0  ;;  %v888_v40 = vsel %vm866_vm3, %v860_v62, 0.0  ;;  %v3950_v21 = vld [vmem:[%s4137_s3 + $0x58] sm:$0xff] }
 0x12d   :  { %v2607_v42 = vpop.f32.mrf.mxu1  ;;  %976 = vadd.xlane.f32.xlu1 %v975_v39  ;;  %889 = vadd.xlane.f32.xlu0 %v888_v40  ;;  %v585_v26 = vpop.f32.mrf.mxu0  ;;  %4145 = vst [vmem:[#allocation7_spill] sm:$0xff] %v3950_v21 }
 0x12e   :  { %v823_v27 = vadd.f32 %v3752_v41, %v804_v38  ;;  %v609_v16 = vmax.f32 %v413_v63, %v585_v26  ;;  %v949_v7 = vmul.f32 %v3896_v25, %v835_v37  ;;  %v861_v0 = vmul.f32 %v3901_v28, %v835_v37  ;;  %v3945_v63 = vld [vmem:[%s4137_s3 + $0xc0] sm:$0xff] }
 0x12f   :  { %v781_v43 = vpop.f32.mrf.mxu1  ;;  %v2555_v45 = vpop.f32.mrf.mxu0  ;;  %4144 = vst [vmem:[#allocation6_spill] sm:$0xff] %v3945_v63 }
 0x130   :  { %v836_v46 = vmax.f32 %v823_v27, 0.0  ;;  %v805_v50 = vmax.f32 %v609_v16, %v781_v43  ;;  %v978_v52 = vsel %vm866_vm3, %v949_v7, 0.0  ;;  %v891_v57 = vsel %vm866_vm3, %v861_v0, 0.0  ;;  %v852_v43 = vld [vmem:[%s4137_s3 + $0x60] sm:$0x3] }
 0x131   :  { %v2610_v59 = vpop.f32.mrf.mxu1  ;;  %979 = vadd.xlane.f32.xlu1 %v978_v52  ;;  %892 = vadd.xlane.f32.xlu0 %v891_v57  ;;  %v590_v30 = vpop.f32.mrf.mxu0 }
 0x132   :  { %v824_v31 = vadd.f32 %v3752_v41, %v805_v50  ;;  %v610_v8 = vmax.f32 %v414_v11, %v590_v30  ;;  %v950_v19 = vmul.f32 %v3913_v47, %v836_v46  ;;  %v862_v12 = vmul.f32 %v3918_v48, %v836_v46  ;;  %v2107_v11 = vld [vmem:[%s4137_s3 + $0xc8] sm:$0x3] }
 0x133   :  { %v786_v60 = vpop.f32.mrf.mxu1  ;;  %v2558_v61 = vpop.f32.mrf.mxu0 }
 0x134   :  { %v837_v15 = vmax.f32 %v824_v31, 0.0  ;;  %v806_v6 = vmax.f32 %v610_v8, %v786_v60  ;;  %v981_v17 = vsel %vm866_vm3, %v950_v19, 0.0  ;;  %v894_v18 = vsel %vm866_vm3, %v862_v12, 0.0 }
 0x135   :  { %v2613_v20 = vpop.f32.mrf.mxu1  ;;  %982 = vadd.xlane.f32.xlu1 %v981_v17  ;;  %895 = vadd.xlane.f32.xlu0 %v894_v18  ;;  %v595_v34 = vpop.f32.mrf.mxu0 }
 0x136   :  { %v825_v35 = vadd.f32 %v3752_v41, %v806_v6  ;;  %v611_v22 = vmax.f32 %v415_v3, %v595_v34  ;;  %v951_v23 = vmul.f32 %v3930_v9, %v837_v15  ;;  %v863_v14 = vmul.f32 %v3935_v10, %v837_v15 }
 0x137   :  { %v791_v5 = vpop.f32.mrf.mxu1  ;;  %v2561_v62 = vpop.f32.mrf.mxu0 }
 0x138   :  { %v838_v24 = vmax.f32 %v825_v35, 0.0  ;;  %v807_v37 = vmax.f32 %v611_v22, %v791_v5  ;;  %v984_v38 = vsel %vm866_vm3, %v951_v23, 0.0  ;;  %v897_v39 = vsel %vm866_vm3, %v863_v14, 0.0 }
 0x139   :  { %v2616_v40 = vpop.f32.mrf.mxu1  ;;  %985 = vadd.xlane.f32.xlu1 %v984_v38  ;;  %898 = vadd.xlane.f32.xlu0 %v897_v39  ;;  %v3954_v42 = vpop.f32.mrf.mxu0 }
 0x13a   :  { %v826_v26 = vadd.f32 %v3752_v41, %v807_v37  ;;  %v952_v27 = vmul.f32 %v3945_v63, %v838_v24  ;;  %v864_v16 = vmul.f32 %v3950_v21, %v838_v24 }
 0x13b   :  { %v3959_v7 = vpop.f32.mrf.mxu1  ;;  %v2635_v0 = vpop.f32.mrf.mxu0 }
 0x13c   :  { %v839_v45 = vmax.f32 %v826_v26, 0.0  ;;  %v987_v46 = vsel %vm866_vm3, %v952_v27, 0.0  ;;  %v900_v50 = vsel %vm866_vm3, %v864_v16, 0.0 }
 0x13d   :  { %v2690_v52 = vpop.f32.mrf.mxu1  ;;  %988 = vadd.xlane.f32.xlu1 %v987_v46  ;;  %901 = vadd.xlane.f32.xlu0 %v900_v50  ;;  %v3969_v57 = vpop.f32.mrf.mxu0 }
 0x13e   :  { %v953_v59 = vmul.f32 %v2107_v11, %v839_v45  ;;  %v865_v30 = vmul.f32 %v852_v43, %v839_v45 }
 0x13f   :  { %v1324_v31 = vpop.f32.mrf.mxu1  ;;  %v2638_v8 = vpop.f32.mrf.mxu0 }
 0x140   :  { %v990_v19 = vsel %vm903_vm4, %v953_v59, 0.0  ;;  %v904_v12 = vsel %vm903_vm4, %v865_v30, 0.0 }
 0x141   :  { %v2693_v3 = vpop.f32.mrf.mxu1  ;;  %991 = vadd.xlane.f32.xlu1 %v990_v19  ;;  %905 = vadd.xlane.f32.xlu0 %v904_v12  ;;  %v3973_v60 = vpop.f32.mrf.mxu0 }
 0x143   :  { %v3975_v61 = vpop.f32.mrf.mxu1  ;;  %v2641_v15 = vpop.f32.mrf.mxu0 }
 0x145   :  { %v2696_v6 = vpop.f32.mrf.mxu1  ;;  %v3977_v17 = vpop.f32.mrf.mxu0 }
 0x147   :  { %v3979_v18 = vpop.f32.mrf.mxu1  ;;  %v2644_v20 = vpop.f32.mrf.mxu0 }
 0x149   :  { %v2699_v34 = vpop.f32.mrf.mxu1  ;;  %v3981_v35 = vpop.f32.mrf.mxu0 }
 0x14b   :  { %v3983_v22 = vpop.f32.mrf.mxu1  ;;  %v2647_v23 = vpop.f32.mrf.mxu0 }
 0x14d   :  { %v2702_v14 = vpop.f32.mrf.mxu1  ;;  %v3985_v5 = vpop.f32.mrf.mxu0 }
 0x14f   :  { %v3987_v62 = vpop.f32.mrf.mxu1  ;;  %v2650_v24 = vpop.f32.mrf.mxu0 }
 0x151   :  { %v2705_v37 = vpop.f32.mrf.mxu1  ;;  %v3989_v38 = vpop.f32.mrf.mxu0 }
 0x153   :  { %v3991_v39 = vpop.f32.mrf.mxu1  ;;  %v2653_v40 = vpop.f32.mrf.mxu0 }
 0x154   :  { %v1383_v40 = vmax.f32 %v3954_v42, %v3959_v7 }
 0x155   :  { %v2708_v26 = vpop.f32.mrf.mxu1  ;;  %v3993_v27 = vpop.f32.mrf.mxu0 }
 0x157   :  { %v3995_v16 = vpop.f32.mrf.mxu1  ;;  %v2656_v0 = vpop.f32.mrf.mxu0 }
 0x159   :  { %v2711_v11 = vpop.f32.mrf.mxu1  ;;  %v3997_v43 = vpop.f32.mrf.mxu0 }
 0x15b   :  { %v3999_v45 = vpop.f32.mrf.mxu1  ;;  %v2659_v46 = vpop.f32.mrf.mxu0 }
 0x15d   :  { %v2714_v50 = vpop.f32.mrf.mxu1  ;;  %v4001_v52 = vpop.f32.mrf.mxu0 }
 0x15f   :  { %v4003_v59 = vpop.f32.mrf.mxu1  ;;  %v2662_v30 = vpop.f32.mrf.mxu0 }
 0x160   :  { %v1384_v30 = vmax.f32 %v3969_v57, %v1324_v31  ;;  %v1386_v31 = vmax.f32 %v3977_v17, %v3979_v18 }
 0x161   :  { %v2717_v8 = vpop.f32.mrf.mxu1  ;;  %v4005_v19 = vpop.f32.mrf.mxu0 }
 0x163   :  { %v4007_v12 = vpop.f32.mrf.mxu1  ;;  %v2665_v3 = vpop.f32.mrf.mxu0 }
 0x165   :  { %v2720_v15 = vpop.f32.mrf.mxu1  ;;  %v4009_v6 = vpop.f32.mrf.mxu0 }
 0x167   :  { %v4011_v20 = vpop.f32.mrf.mxu1  ;;  %v2668_v34 = vpop.f32.mrf.mxu0 }
 0x169   :  { %v2723_v23 = vpop.f32.mrf.mxu1  ;;  %v4013_v14 = vpop.f32.mrf.mxu0 }
 0x16b   :  { %v4015_v24 = vpop.f32.mrf.mxu1  ;;  %v2671_v37 = vpop.f32.mrf.mxu0 }
 0x16c   :  { %v1385_v37 = vmax.f32 %v3973_v60, %v3975_v61 }
 0x16d   :  { %v2726_v26 = vpop.f32.mrf.mxu1  ;;  %v1515_v0 = vpop.f32.mrf.mxu0 }
 0x16e   :  { %v1579_v11 = vmax.f32 %v1383_v40, %v1515_v0 }
 0x16f   :  { %v1711_v46 = vpop.f32.mrf.mxu1  ;;  %v2745_v50 = vpop.f32.mrf.mxu0 }
 0x170   :  { %v1775_v8 = vmax.f32 %v1579_v11, %v1711_v46 }
 0x171   :  { %v2800_v3 = vpop.f32.mrf.mxu1  ;;  %v1520_v15 = vpop.f32.mrf.mxu0 }
 0x172   :  { %v1788_v34 = vadd.f32 %v3752_v41, %v1775_v8  ;;  %v1580_v23 = vmax.f32 %v1384_v30, %v1520_v15 }
 0x173   :  { %v1716_v63 = vpop.f32.mrf.mxu1  ;;  %v2748_v21 = vpop.f32.mrf.mxu0 }
 0x174   :  { %v1801_v9 = vmax.f32 %v1788_v34, 0.0  ;;  %v1776_v42 = vmax.f32 %v1580_v23, %v1716_v63 }
 0x175   :  { %v2803_v7 = vpop.f32.mrf.mxu1  ;;  %v1525_v26 = vpop.f32.mrf.mxu0 }
 0x176   :  { %v1789_v40 = vadd.f32 %v3752_v41, %v1776_v42  ;;  %v1581_v0 = vmax.f32 %v1385_v37, %v1525_v26  ;;  %v1827_v57 = vmul.f32 %v1801_v9, %v3765_v55  ;;  %v1911_v60 = vmul.f32 %v3760_v54, %v1801_v9 }
 0x177   :  { %v2751_v11 = vpop.f32.mrf.mxu0  ;;  %v1721_v46 = vpop.f32.mrf.mxu1  ;;  %v1387_v55 = vmax.f32 %v3981_v35, %v3983_v22  ;;  %v1388_v35 = vmax.f32 %v3985_v5, %v3987_v62  ;;  %v1389_v5 = vmax.f32 %v3989_v38, %v3991_v39  ;;  %v1390_v38 = vmax.f32 %v3993_v27, %v3995_v16 }
 0x178   :  { %v1802_v50 = vmax.f32 %v1789_v40, 0.0  ;;  %v1777_v30 = vmax.f32 %v1581_v0, %v1721_v46  ;;  %v1840_v21 = vsel %vm866_vm3, %v1827_v57, 0.0  ;;  %v1924_v42 = vsel %vm866_vm3, %v1911_v60, 0.0 }
 0x179   :  { %v2806_v61 = vpop.f32.mrf.mxu1  ;;  %1841 = vadd.xlane.f32.xlu0 %v1840_v21  ;;  %v1530_v63 = vpop.f32.mrf.mxu0  ;;  %v1391_v27 = vmax.f32 %v3997_v43, %v3999_v45  ;;  %v1392_v43 = vmax.f32 %v4001_v52, %v4003_v59  ;;  %v1393_v52 = vmax.f32 %v4005_v19, %v4007_v12  ;;  %v1394_v19 = vmax.f32 %v4009_v6, %v4011_v20 }
 0x17a   :  { %v1790_v8 = vadd.f32 %v3752_v41, %v1777_v30  ;;  %v1582_v3 = vmax.f32 %v1386_v31, %v1530_v63  ;;  %v1828_v15 = vmul.f32 %v1802_v50, %v3782_v58  ;;  %v1912_v34 = vmul.f32 %v3777_v56, %v1802_v50 }
 0x17b   :  { %v2754_v17 = vpop.f32.mrf.mxu0  ;;  %v1726_v18 = vpop.f32.mrf.mxu1  ;;  %v1395_v20 = vmax.f32 %v4013_v14, %v4015_v24 }
 0x17c   :  { %v1803_v23 = vmax.f32 %v1790_v8, 0.0  ;;  %v1778_v37 = vmax.f32 %v1582_v3, %v1726_v18  ;;  %v1843_v54 = vsel %vm866_vm3, %v1828_v15, 0.0  ;;  %v1927_v0 = vsel %vm866_vm3, %v1912_v34, 0.0 }
 0x17d   :  { %v2809_v9 = vpop.f32.mrf.mxu1  ;;  %1925 = vadd.xlane.f32.xlu0 %v1924_v42  ;;  %1844 = vadd.xlane.f32.xlu1 %v1843_v54  ;;  %v1535_v7 = vpop.f32.mrf.mxu0 }
 0x17e   :  { %v1791_v26 = vadd.f32 %v3752_v41, %v1778_v37  ;;  %v1583_v58 = vmax.f32 %v1387_v55, %v1535_v7  ;;  %v1829_v40 = vmul.f32 %v1803_v23, %v3799_v36  ;;  %v1913_v46 = vmul.f32 %v3794_v33, %v1803_v23 }
 0x17f   :  { %v2757_v22 = vpop.f32.mrf.mxu0  ;;  %v1731_v56 = vpop.f32.mrf.mxu1 }
 0x180   :  { %v1804_v57 = vmax.f32 %v1791_v26, 0.0  ;;  %v1779_v31 = vmax.f32 %v1583_v58, %v1731_v56  ;;  %v1846_v11 = vsel %vm866_vm3, %v1829_v40, 0.0  ;;  %v1930_v33 = vsel %vm866_vm3, %v1913_v46, 0.0 }
 0x181   :  { %v2812_v50 = vpop.f32.mrf.mxu1  ;;  %1928 = vadd.xlane.f32.xlu1 %v1927_v0  ;;  %1847 = vadd.xlane.f32.xlu0 %v1846_v11  ;;  %v1540_v30 = vpop.f32.mrf.mxu0 }
 0x182   :  { %v1792_v21 = vadd.f32 %v3752_v41, %v1779_v31  ;;  %v1584_v36 = vmax.f32 %v1388_v35, %v1540_v30  ;;  %v1830_v60 = vmul.f32 %v1804_v57, %v3816_v44  ;;  %v1914_v63 = vmul.f32 %v3811_v53, %v1804_v57 }
 0x183   :  { %v2760_v62 = vpop.f32.mrf.mxu0  ;;  %v1736_v61 = vpop.f32.mrf.mxu1 }
 0x184   :  { %v1805_v8 = vmax.f32 %v1792_v21, 0.0  ;;  %v1780_v3 = vmax.f32 %v1584_v36, %v1736_v61  ;;  %v1849_v15 = vsel %vm866_vm3, %v1830_v60, 0.0  ;;  %v1933_v23 = vsel %vm866_vm3, %v1914_v63, 0.0 }
 0x185   :  { %v2815_v55 = vpop.f32.mrf.mxu1  ;;  %1931 = vadd.xlane.f32.xlu1 %v1930_v33  ;;  %1850 = vadd.xlane.f32.xlu0 %v1849_v15  ;;  %v1545_v17 = vpop.f32.mrf.mxu0 }
 0x186   :  { %v1793_v18 = vadd.f32 %v3752_v41, %v1780_v3  ;;  %v1585_v44 = vmax.f32 %v1389_v5, %v1545_v17  ;;  %v1831_v34 = vmul.f32 %v1805_v8, %v3833_v4  ;;  %v1915_v9 = vmul.f32 %v3828_v13, %v1805_v8 }
 0x187   :  { %v2763_v39 = vpop.f32.mrf.mxu0  ;;  %v1741_v53 = vpop.f32.mrf.mxu1 }
 0x188   :  { %v1806_v37 = vmax.f32 %v1793_v18, 0.0  ;;  %v1781_v42 = vmax.f32 %v1585_v44, %v1741_v53  ;;  %v1852_v54 = vsel %vm866_vm3, %v1831_v34, 0.0  ;;  %v1936_v13 = vsel %vm866_vm3, %v1915_v9, 0.0 }
 0x189   :  { %v2818_v7 = vpop.f32.mrf.mxu1  ;;  %1934 = vadd.xlane.f32.xlu1 %v1933_v23  ;;  %1853 = vadd.xlane.f32.xlu0 %v1852_v54  ;;  %v1550_v26 = vpop.f32.mrf.mxu0 }
 0x18a   :  { %v1794_v58 = vadd.f32 %v3752_v41, %v1781_v42  ;;  %v1586_v4 = vmax.f32 %v1390_v38, %v1550_v26  ;;  %v1832_v40 = vmul.f32 %v1806_v37, %v3850_v32  ;;  %v1916_v22 = vmul.f32 %v3845_v29, %v1806_v37 }
 0x18b   :  { %v2766_v16 = vpop.f32.mrf.mxu0  ;;  %v1746_v35 = vpop.f32.mrf.mxu1 }
 0x18c   :  { %v1807_v56 = vmax.f32 %v1794_v58, 0.0  ;;  %v1782_v0 = vmax.f32 %v1586_v4, %v1746_v35  ;;  %v1855_v57 = vsel %vm866_vm3, %v1832_v40, 0.0  ;;  %v1939_v30 = vsel %vm866_vm3, %v1916_v22, 0.0 }
 0x18d   :  { %v2821_v31 = vpop.f32.mrf.mxu1  ;;  %1937 = vadd.xlane.f32.xlu1 %v1936_v13  ;;  %1856 = vadd.xlane.f32.xlu0 %v1855_v57  ;;  %v1555_v11 = vpop.f32.mrf.mxu0 }
 0x18e   :  { %v1795_v46 = vadd.f32 %v3752_v41, %v1782_v0  ;;  %v1587_v32 = vmax.f32 %v1391_v27, %v1555_v11  ;;  %v1833_v50 = vmul.f32 %v1807_v56, %v3867_v51  ;;  %v1917_v5 = vmul.f32 %v3862_v49, %v1807_v56 }
 0x18f   :  { %v2769_v45 = vpop.f32.mrf.mxu0  ;;  %v1751_v29 = vpop.f32.mrf.mxu1 }
 0x190   :  { %v1808_v21 = vmax.f32 %v1795_v46, 0.0  ;;  %v1783_v36 = vmax.f32 %v1587_v32, %v1751_v29  ;;  %v1858_v60 = vsel %vm866_vm3, %v1833_v50, 0.0  ;;  %v1942_v49 = vsel %vm866_vm3, %v1917_v5, 0.0 }
 0x191   :  { %v2824_v62 = vpop.f32.mrf.mxu1  ;;  %1940 = vadd.xlane.f32.xlu1 %v1939_v30  ;;  %1859 = vadd.xlane.f32.xlu0 %v1858_v60  ;;  %v1560_v61 = vpop.f32.mrf.mxu0  ;;  %v4147_v60 = vld [vmem:[#allocation7_spill] sm:$0xff] }
 0x192   :  { %v1796_v63 = vadd.f32 %v3752_v41, %v1783_v36  ;;  %v1588_v51 = vmax.f32 %v1392_v43, %v1560_v61  ;;  %v1834_v8 = vmul.f32 %v1808_v21, %v3884_v2  ;;  %v1918_v33 = vmul.f32 %v3879_v1, %v1808_v21  ;;  %v4146_v43 = vld [vmem:[#allocation5_spill] sm:$0xff] }
 0x193   :  { %v2772_v59 = vpop.f32.mrf.mxu0  ;;  %v1756_v3 = vpop.f32.mrf.mxu1 }
 0x194   :  { %v1809_v15 = vmax.f32 %v1796_v63, 0.0  ;;  %v1784_v55 = vmax.f32 %v1588_v51, %v1756_v3  ;;  %v1861_v17 = vsel %vm866_vm3, %v1834_v8, 0.0  ;;  %v1945_v39 = vsel %vm866_vm3, %v1918_v33, 0.0  ;;  %v4148_v51 = vld [vmem:[#allocation6_spill] sm:$0xff] }
 0x195   :  { %v2827_v18 = vpop.f32.mrf.mxu1  ;;  %1943 = vadd.xlane.f32.xlu1 %v1942_v49  ;;  %1862 = vadd.xlane.f32.xlu0 %v1861_v17  ;;  %v1565_v44 = vpop.f32.mrf.mxu0 }
 0x196   :  { %v1797_v34 = vadd.f32 %v3752_v41, %v1784_v55  ;;  %v1589_v2 = vmax.f32 %v1393_v52, %v1565_v44  ;;  %v1835_v38 = vmul.f32 %v1809_v15, %v3901_v28  ;;  %v1919_v42 = vmul.f32 %v3896_v25, %v1809_v15 }
 0x197   :  { %v2775_v12 = vpop.f32.mrf.mxu0  ;;  %v1761_v1 = vpop.f32.mrf.mxu1 }
 0x198   :  { %v1810_v53 = vmax.f32 %v1797_v34, 0.0  ;;  %v1785_v23 = vmax.f32 %v1589_v2, %v1761_v1  ;;  %v1864_v37 = vsel %vm866_vm3, %v1835_v38, 0.0  ;;  %v1948_v35 = vsel %vm866_vm3, %v1919_v42, 0.0 }
 0x199   :  { %v2830_v54 = vpop.f32.mrf.mxu1  ;;  %1946 = vadd.xlane.f32.xlu1 %v1945_v39  ;;  %1865 = vadd.xlane.f32.xlu0 %v1864_v37  ;;  %v1570_v9 = vpop.f32.mrf.mxu0 }
 0x19a   :  { %v1798_v7 = vadd.f32 %v3752_v41, %v1785_v23  ;;  %v1590_v28 = vmax.f32 %v1394_v19, %v1570_v9  ;;  %v956_v26 = vpop.xlane.xlu1 %955  ;;  %v869_v58 = vpop.xlane.xlu0 %868  ;;  %v1836_v6 = vmul.f32 %v1810_v53, %v3918_v48  ;;  %v1920_v27 = vmul.f32 %v3913_v47, %v1810_v53 }
 0x19b   :  { %v2778_v4 = vpop.f32.mrf.mxu0  ;;  %v1766_v40 = vpop.f32.mrf.mxu1 }
 0x19c   :  { %v1811_v16 = vmax.f32 %v1798_v7, 0.0  ;;  %v1786_v25 = vmax.f32 %v1590_v28, %v1766_v40  ;;  %v1867_v22 = vsel %vm866_vm3, %v1836_v6, 0.0  ;;  %v1951_v47 = vsel %vm866_vm3, %v1920_v27, 0.0 }
 0x19d   :  { %v2833_v56 = vpop.f32.mrf.mxu1  ;;  %1949 = vadd.xlane.f32.xlu1 %v1948_v35  ;;  %1868 = vadd.xlane.f32.xlu0 %v1867_v22  ;;  %v1575_v0 = vpop.f32.mrf.mxu0 }
 0x19e   :  { %v1799_v13 = vadd.f32 %v3752_v41, %v1786_v25  ;;  %v1591_v48 = vmax.f32 %v1395_v20, %v1575_v0  ;;  %v959_v57 = vpop.xlane.xlu1 %958  ;;  %v872_v31 = vpop.xlane.xlu0 %871  ;;  %v1837_v14 = vmul.f32 %v1811_v16, %v3935_v10  ;;  %v1921_v45 = vmul.f32 %v4146_v43, %v1811_v16  ;;  %v1826_v10 = vld [vmem:[%s4137_s3 + $0x60] sm:$0x3] }
 0x19f   :  { %v1771_v24 = vpop.f32.mrf.mxu1  ;;  %v2781_v11 = vpop.f32.mrf.mxu0  ;;  %v993_v19 = vadd.f32 %v959_v57, %v956_v26  ;;  %v907_v12 = vadd.f32 %v872_v31, %v869_v58 }
 0x1a0   :  { %v1812_v46 = vmax.f32 %v1799_v13, 0.0  ;;  %v1787_v32 = vmax.f32 %v1591_v48, %v1771_v24  ;;  %v1870_v50 = vsel %vm866_vm3, %v1837_v14, 0.0  ;;  %v1954_v61 = vsel %vm866_vm3, %v1921_v45, 0.0 }
 0x1a1   :  { %1952 = vadd.xlane.f32.xlu1 %v1951_v47  ;;  %1871 = vadd.xlane.f32.xlu0 %v1870_v50  ;;  %v2836_v29 = vpop.f32.mrf.mxu1 }
 0x1a2   :  { %v1800_v30 = vadd.f32 %v3752_v41, %v1787_v32  ;;  %v962_v21 = vpop.xlane.xlu1 %961  ;;  %v875_v36 = vpop.xlane.xlu0 %874  ;;  %v1838_v5 = vmul.f32 %v1812_v46, %v4147_v60  ;;  %v1922_v8 = vmul.f32 %v4148_v51, %v1812_v46  ;;  %v2228_v41 = vld [vmem:[%s4137_s3 + $0xc8] sm:$0x3] }
 0x1a3   :  { %v994_v53 = vadd.f32 %v993_v19, %v962_v21  ;;  %v908_v23 = vadd.f32 %v907_v12, %v875_v36  ;;  %v31_v21 = vlaneseq }
 0x1a4   :  { %v1813_v62 = vmax.f32 %v1800_v30, 0.0  ;;  %v1873_v63 = vsel %vm866_vm3, %v1838_v5, 0.0  ;;  %v1957_v33 = vsel %vm866_vm3, %v1922_v8, 0.0 }
 0x1a5   :  { %1955 = vadd.xlane.f32.xlu1 %v1954_v61  ;;  %1874 = vadd.xlane.f32.xlu0 %v1873_v63 }
 0x1a6   :  { %v965_v52 = vpop.xlane.xlu1 %964  ;;  %v878_v59 = vpop.xlane.xlu0 %877  ;;  %v1839_v3 = vmul.f32 %v1826_v10, %v1813_v62  ;;  %v1923_v55 = vmul.f32 %v2228_v41, %v1813_v62  ;;  %v4113_v62 = vand.u32 127, %v31_v21 }
 0x1a7   :  { %v995_v37 = vadd.f32 %v994_v53, %v965_v52  ;;  %v909_v42 = vadd.f32 %v908_v23, %v878_v59  ;;  %v4119_v59 = vld [vmem:[%s4138_s4] sm:$0x1]  ;;  %s2864_s4 = smov [#allocation2]  }
 0x1a8   :  { %v1876_v15 = vsel %vm903_vm4, %v1839_v3, 0.0  ;;  %v1960_v18 = vsel %vm903_vm4, %v1923_v55, 0.0  ;;  %vm1012_vm6 = vcmp.eq.s32.totalorder %v4113_v62, 0  ;;  %s1991_s1 = sshll.u32 %s2864_s4, 4  ;;  %s1992_s1 = int_to_ptr.vmem [resolvable:$true] %s1991_s1 }
 0x1a9   :  { %1958 = vadd.xlane.f32.xlu1 %v1957_v33  ;;  %1877 = vadd.xlane.f32.xlu0 %v1876_v15  ;;  %s2840_s2 = scalar_lea.vmem %s1992_s1, 32  ;;  %p2845_p1 = scmp.lt.s32.totalorder %s1992_s1, %s1992_s1 }
 0x1aa   :  { %v968_v49 = vpop.xlane.xlu1 %967  ;;  %v881_v17 = vpop.xlane.xlu0 %880  ;;  %p2841_p0 = scmp.ne.s32.totalorder %s1992_s1, %s2840_s2  ;;  %p2846_p2 = scmp.lt.s32.totalorder %s2840_s2, %s2840_s2 }
 0x1ab   :  { %v996_v7 = vadd.f32 %v995_v37, %v968_v49  ;;  %v910_v28 = vadd.f32 %v909_v42, %v881_v17 }
 0x1ac   :  { %p2847_p3 = por %p2846_p2, %p2845_p1 }
 0x1ad   :  { %1961 = vadd.xlane.f32.xlu1 %v1960_v18 }
 0x1ae   :  { %v971_v44 = vpop.xlane.xlu1 %970  ;;  %v884_v34 = vpop.xlane.xlu0 %883  ;;  %p2848_p4 = pnand %p2847_p3, %p2841_p0 }
 0x1af   :  { %v997_v6 = vadd.f32 %v996_v7, %v971_v44  ;;  %v911_v20 = vadd.f32 %v910_v28, %v884_v34 }
 0x1b2   :  { %v974_v2 = vpop.xlane.xlu1 %973  ;;  %v887_v38 = vpop.xlane.xlu0 %886 }
 0x1b3   :  { %v998_v27 = vadd.f32 %v997_v6, %v974_v2  ;;  %v912_v16 = vadd.f32 %v911_v20, %v887_v38 }
 0x1b6   :  { %v977_v1 = vpop.xlane.xlu1 %976  ;;  %v890_v39 = vpop.xlane.xlu0 %889 }
 0x1b7   :  { %v999_v25 = vadd.f32 %v998_v27, %v977_v1  ;;  %v913_v35 = vadd.f32 %v912_v16, %v890_v39 }
 0x1ba   :  { %v980_v54 = vpop.xlane.xlu1 %979  ;;  %v893_v9 = vpop.xlane.xlu0 %892 }
 0x1bb   :  { %v1000_v22 = vadd.f32 %v999_v25, %v980_v54  ;;  %v914_v56 = vadd.f32 %v913_v35, %v893_v9 }
 0x1be   :  { %v983_v4 = vpop.xlane.xlu1 %982  ;;  %v896_v40 = vpop.xlane.xlu0 %895 }
 0x1bf   :  { %v1001_v0 = vadd.f32 %v1000_v22, %v983_v4  ;;  %v915_v13 = vadd.f32 %v914_v56, %v896_v40 }
 0x1c2   :  { %v986_v26 = vpop.xlane.xlu1 %985  ;;  %v899_v58 = vpop.xlane.xlu0 %898 }
 0x1c3   :  { %v1002_v31 = vadd.f32 %v1001_v0, %v986_v26  ;;  %v916_v14 = vadd.f32 %v915_v13, %v899_v58 }
 0x1c6   :  { %v989_v48 = vpop.xlane.xlu1 %988  ;;  %v902_v57 = vpop.xlane.xlu0 %901 }
 0x1c7   :  { %v1003_v24 = vadd.f32 %v1002_v31, %v989_v48  ;;  %v917_v47 = vadd.f32 %v916_v14, %v902_v57 }
 0x1ca   :  { %v992_v11 = vpop.xlane.xlu1 %991  ;;  %v906_v46 = vpop.xlane.xlu0 %905 }
 0x1cb   :  { %v1004_v32 = vsel %vm918_vm5, %v992_v11, 0.0  ;;  %v919_v50 = vsel %vm918_vm5, %v906_v46, 0.0 }
 0x1cc   :  { %v1005_v43 = vadd.f32 %v1004_v32, %v1003_v24  ;;  %v920_v45 = vadd.f32 %v919_v50, %v917_v47 }
 0x1ce   :  { %v1006_v29 = vrot.slane %v1005_v43, 4  ;;  %v921_v30 = vrot.slane %v920_v45, 4 }
 0x1d0   :  { %v1007_v36 = vadd.f32 %v1006_v29, %v1005_v43  ;;  %v922_v60 = vadd.f32 %v921_v30, %v920_v45 }
 0x1d2   :  { %v1008_v5 = vrot.slane %v1007_v36, 2  ;;  %v923_v10 = vrot.slane %v922_v60, 2 }
 0x1d4   :  { %v1009_v61 = vadd.f32 %v1008_v5, %v1007_v36  ;;  %v924_v63 = vadd.f32 %v923_v10, %v922_v60 }
 0x1d6   :  { %v1010_v51 = vrot.slane %v1009_v61, 1  ;;  %v925_v8 = vrot.slane %v924_v63, 1 }
 0x1d8   :  { %v1011_v41 = vadd.f32 %v1010_v51, %v1009_v61  ;;  %v926_v52 = vadd.f32 %v925_v8, %v924_v63 }
 0x1da   :  { %v1013_v3 = vsel %vm1012_vm6, %v926_v52, %v1011_v41 }
 0x1db   :  { %v1014_v33 = vadd.f32 %v1013_v3, %v4119_v59 }
 0x1dd   :  { %1016 = vst.msk [vmem:[#allocation2] sm:$0x1] %vm1015_vm7, %v1014_v33 }
 0x202   :  { %v1842_v15 = vpop.xlane.xlu0 %1841 }
 0x206   :  { %v1926_v55 = vpop.xlane.xlu0 %1925  ;;  %v1845_v49 = vpop.xlane.xlu1 %1844 }
 0x207   :  { %v1879_v53 = vadd.f32 %v1845_v49, %v1842_v15 }
 0x20a   :  { %v1929_v17 = vpop.xlane.xlu1 %1928  ;;  %v1848_v18 = vpop.xlane.xlu0 %1847 }
 0x20b   :  { %v1880_v42 = vadd.f32 %v1879_v53, %v1848_v18  ;;  %v1963_v54 = vadd.f32 %v1929_v17, %v1926_v55 }
 0x20e   :  { %v1932_v44 = vpop.xlane.xlu1 %1931  ;;  %v1851_v34 = vpop.xlane.xlu0 %1850 }
 0x20f   :  { %v1881_v9 = vadd.f32 %v1880_v42, %v1851_v34  ;;  %v1964_v6 = vadd.f32 %v1963_v54, %v1932_v44 }
 0x212   :  { %v1935_v2 = vpop.xlane.xlu1 %1934  ;;  %v1854_v38 = vpop.xlane.xlu0 %1853 }
 0x213   :  { %v1882_v20 = vadd.f32 %v1881_v9, %v1854_v38  ;;  %v1965_v4 = vadd.f32 %v1964_v6, %v1935_v2 }
 0x216   :  { %v1938_v19 = vpop.xlane.xlu1 %1937  ;;  %v1857_v12 = vpop.xlane.xlu0 %1856 }
 0x217   :  { %v1883_v40 = vadd.f32 %v1882_v20, %v1857_v12  ;;  %v1966_v25 = vadd.f32 %v1965_v4, %v1938_v19 }
 0x21a   :  { %v1941_v1 = vpop.xlane.xlu1 %1940  ;;  %v1860_v39 = vpop.xlane.xlu0 %1859 }
 0x21b   :  { %v1884_v35 = vadd.f32 %v1883_v40, %v1860_v39  ;;  %v1967_v26 = vadd.f32 %v1966_v25, %v1941_v1 }
 0x21e   :  { %v1944_v23 = vpop.xlane.xlu1 %1943  ;;  %v1863_v37 = vpop.xlane.xlu0 %1862 }
 0x21f   :  { %v1885_v58 = vadd.f32 %v1884_v35, %v1863_v37  ;;  %v1968_v0 = vadd.f32 %v1967_v26, %v1944_v23 }
 0x222   :  { %v1947_v7 = vpop.xlane.xlu1 %1946  ;;  %v1866_v28 = vpop.xlane.xlu0 %1865 }
 0x223   :  { %v1886_v13 = vadd.f32 %v1885_v58, %v1866_v28  ;;  %v1969_v48 = vadd.f32 %v1968_v0, %v1947_v7 }
 0x226   :  { %v1950_v27 = vpop.xlane.xlu1 %1949  ;;  %v1869_v16 = vpop.xlane.xlu0 %1868 }
 0x227   :  { %v1887_v57 = vadd.f32 %v1886_v13, %v1869_v16  ;;  %v1970_v24 = vadd.f32 %v1969_v48, %v1950_v27 }
 0x22a   :  { %v1953_v22 = vpop.xlane.xlu1 %1952  ;;  %v1872_v56 = vpop.xlane.xlu0 %1871 }
 0x22b   :  { %v1888_v47 = vadd.f32 %v1887_v57, %v1872_v56  ;;  %v1971_v11 = vadd.f32 %v1970_v24, %v1953_v22 }
 0x22e   :  { %v1956_v31 = vpop.xlane.xlu1 %1955  ;;  %v1875_v14 = vpop.xlane.xlu0 %1874 }
 0x22f   :  { %v1889_v46 = vadd.f32 %v1888_v47, %v1875_v14  ;;  %v1972_v45 = vadd.f32 %v1971_v11, %v1956_v31 }
 0x232   :  { %v1959_v32 = vpop.xlane.xlu1 %1958  ;;  %v1878_v50 = vpop.xlane.xlu0 %1877 }
 0x233   :  { %v1890_v43 = vsel %vm918_vm5, %v1878_v50, 0.0  ;;  %v1973_v30 = vadd.f32 %v1972_v45, %v1959_v32 }
 0x234   :  { %v1891_v29 = vadd.f32 %v1890_v43, %v1889_v46 }
 0x236   :  { %v1892_v21 = vrot.slane %v1891_v29, 4  ;;  %v1962_v36 = vpop.xlane.xlu1 %1961 }
 0x237   :  { %v1974_v60 = vsel %vm918_vm5, %v1962_v36, 0.0 }
 0x238   :  { %v1893_v5 = vadd.f32 %v1892_v21, %v1891_v29  ;;  %v1975_v10 = vadd.f32 %v1974_v60, %v1973_v30 }
 0x23a   :  { %v1894_v61 = vrot.slane %v1893_v5, 2  ;;  %v1976_v63 = vrot.slane %v1975_v10, 4 }
 0x23c   :  { %v1895_v51 = vadd.f32 %v1894_v61, %v1893_v5  ;;  %v1977_v8 = vadd.f32 %v1976_v63, %v1975_v10 }
 0x23e   :  { %v1978_v41 = vrot.slane %v1977_v8, 2  ;;  %v1896_v52 = vrot.slane %v1895_v51, 1 }
 0x240   :  { %v1979_v3 = vadd.f32 %v1978_v41, %v1977_v8  ;;  %v1897_v15 = vadd.f32 %v1896_v52, %v1895_v51 }
 0x242   :  { %v1980_v33 = vrot.slane %v1979_v3, 1 }
 0x244   :  { %v1981_v55 = vadd.f32 %v1980_v33, %v1979_v3 }
 0x246   :  { %v1982_v49 = vsel %vm1012_vm6, %v1897_v15, %v1981_v55 }
 0x247   :  { %v1983_v17 = vadd.f32 %v1982_v49, %v4119_v59 }
 0x249   :  { %1984 = vst.msk [vmem:[#allocation2 + $0x1] sm:$0x1] %vm1015_vm7, %v1983_v17 }
 0x24a   :  { %2851 = shalt.err (!%p2848_p4)
}
 0x24b   :  { %1994 = dma.vmem_to_hbm [thread:$0]  %s1992_s1, 32, %s4139_s5, [#allocation3]  }
 0x24c   :  { %2860 = dma.done.wait [#allocation3], 32  }
 0x24d   :  { %2861 = vsyncadd [#allocation3], 4294967264 }
 0x24e   :  { %1998 = vsyncpa [#allocation3], 1 }

</bundles_post_ra>
